<compile_context>
chip_gen: v7x
topology: tpu7x:2x2x1
jax: 0.10.0
libtpu: 0.0.40
codegen_flags: <defaults>
</compile_context>

<pallas_src>
import functools

import numpy as np
import jax
import jax.numpy as jnp
from jax import lax
from jax.experimental import pallas as pl
from jax.experimental.pallas import tpu as pltpu

LN_EPS = 1e-5  # nn.LayerNorm default eps


# ----------------------------- kernel helpers ------------------------------

def _layer_norm(h, gamma, beta):
    """Fused one-pass LayerNorm over the channel (sublane) axis.

    h: [H, T] f32, gamma/beta: [H, 1] f32.
    """
    mean = jnp.mean(h, axis=0, keepdims=True)
    var = jnp.maximum(jnp.mean(h * h, axis=0, keepdims=True) - mean * mean, 0.0)
    return (h - mean) * lax.rsqrt(var + LN_EPS) * gamma + beta


# --------------------------------- kernel ----------------------------------

def _encoder_kernel(conv_kernels, paddings, temperature, matmul_dtype, *refs):
    n_layers = len(conv_kernels)
    it = iter(refs)
    x_ref = next(it)                       # [1, Cin, T]   f32
    w0_ref = next(it)                      # [H, Cin]      matmul_dtype
    b0_ref = next(it)                      # [H, 1]        f32
    layer_refs = [tuple(next(it) for _ in range(4)) for _ in range(n_layers)]
    gln_ref = next(it)                     # [H, 1]
    bln_ref = next(it)                     # [H, 1]
    wl_ref = next(it)                      # [nc, H]       matmul_dtype
    bl_ref = next(it)                      # [nc, 1]
    embT_ref = next(it)                    # [ed, nc]      f32
    gum_ref = next(it)                     # [1, nc, T]    f32 (gumbel noise)
    logits_ref = next(it)                  # out: [1, nc, T]
    out_ref = next(it)                     # out: [1, ed, T]

    x = x_ref[0]                           # [Cin, T]
    T = x.shape[-1]

    # conv_initial: 1x1 conv == [H, Cin] @ [Cin, T]
    h = jnp.dot(w0_ref[...], x.astype(matmul_dtype),
                preferred_element_type=jnp.float32) + b0_ref[...]
    H = h.shape[0]
    col = lax.broadcasted_iota(jnp.int32, (H, T), 1)   # time index along lanes

    # conv residual + LayerNorm blocks
    # TODO(synk): ConvResLNBlk source not provided; assumed conv -> LN -> ReLU -> residual.
    for (w_ref, b_ref, g_ref, be_ref), k, p in zip(layer_refs, conv_kernels, paddings):
        taps = []
        for j in range(k):
            d = j - p                      # tap_j[:, t] = h[:, t + d], zero outside [0, T)
            if d == 0:
                taps.append(h)
            else:
                rolled = pltpu.roll(h, shift=(-d) % T, axis=1)   # lane roll (XLU)
                valid = jnp.logical_and(col + d >= 0, col + d < T)
                taps.append(jnp.where(valid, rolled, 0.0))
        rhs = taps[0] if k == 1 else jnp.concatenate(taps, axis=0)   # [k*H, T]
        # single fused MXU matmul: [H, k*H] @ [k*H, T]
        c = jnp.dot(w_ref[...], rhs.astype(matmul_dtype),
                    preferred_element_type=jnp.float32) + b_ref[...]
        c = _layer_norm(c, g_ref[...], be_ref[...])
        c = jnp.maximum(c, 0.0)            # TODO(synk): activation assumed ReLU
        h = h + c

    # final activation + out LayerNorm
    h = jnp.maximum(h, 0.0)
    h = _layer_norm(h, gln_ref[...], bln_ref[...])

    # logit_linear: [nc, H] @ [H, T]
    logits = jnp.dot(wl_ref[...], h.astype(matmul_dtype),
                     preferred_element_type=jnp.float32) + bl_ref[...]
    logits_ref[0] = logits                 # lane-dense store (T on lanes)

    # gumbel-softmax with hard=True: forward value is one-hot of argmax (class axis)
    nc = logits.shape[0]
    y = (logits + gum_ref[0]) * (1.0 / temperature)
    m = jnp.max(y, axis=0, keepdims=True)
    row = lax.broadcasted_iota(jnp.int32, y.shape, 0)
    first = jnp.min(jnp.where(y == m, row, nc), axis=0, keepdims=True)
    onehot = (row == first).astype(jnp.float32)        # [nc, T]

    # embed lookup: embeds^T @ one-hot  ->  [ed, T]  (kept in f32, exact selection)
    out_ref[0] = jnp.dot(embT_ref[...], onehot, preferred_element_type=jnp.float32)


# -------------------------------- wrapper -----------------------------------

def _vmem_limit_bytes(Cin, T, H, nc, ed, conv_kernels):
    f32, bf16 = 4, 2
    k_max = max(conv_kernels) if conv_kernels else 1
    tiles = (Cin * T + 2 * nc * T + ed * T) * f32                 # x, gumbel, logits, out
    weights = (H * Cin + nc * H) * bf16 + (H + nc + ed * nc) * f32
    for k in conv_kernels:
        weights += k * H * H * bf16 + 3 * H * f32
    live = (k_max + 4) * H * T * f32                              # taps + h + c intermediates
    est = 2 * (tiles + weights) + live + (8 << 20)
    # >= 32 MiB (override v5e's 16 MiB scoped default), <= 48 MiB (v7x has 64 MiB physical)
    return int(min(max(est, 32 << 20), 48 << 20))


def tv_conv_disc_ln_encoder(x, params, gumbel_noise, conv_kernels, paddings,
                            temperature, *, matmul_dtype=jnp.bfloat16):
    """x: [B, Cin, T] -> (logits [B, n_class, T], out [B, embd_dim, T])."""
    B, Cin, T = x.shape
    H = params["w0"].shape[0]
    nc = params["w_logit"].shape[0]
    ed = params["embeds"].shape[1]

    x = x.astype(jnp.float32)
    gum = gumbel_noise.astype(jnp.float32)

    inputs = [x, params["w0"].astype(matmul_dtype), params["b0"]]
    in_specs = [
        pl.BlockSpec((1, Cin, T), lambda b: (b, 0, 0)),
        pl.BlockSpec((H, Cin), lambda b: (0, 0)),
        pl.BlockSpec((H, 1), lambda b: (0, 0)),
    ]
    for (w, bias, g, be), k in zip(params["layers"], conv_kernels):
        # PyTorch conv weight [C_out, C_in, k] -> fused lhs [C_out, k*C_in]
        w_fused = jnp.transpose(w, (0, 2, 1)).reshape(H, k * H).astype(matmul_dtype)
        inputs += [w_fused, bias, g, be]
        in_specs += [
            pl.BlockSpec((H, k * H), lambda b: (0, 0)),
            pl.BlockSpec((H, 1), lambda b: (0, 0)),
            pl.BlockSpec((H, 1), lambda b: (0, 0)),
            pl.BlockSpec((H, 1), lambda b: (0, 0)),
        ]
    emb_t = jnp.transpose(params["embeds"], (1, 0))   # [ed, nc]  (tiny, done once)
    inputs += [params["g_ln"], params["b_ln"],
               params["w_logit"].astype(matmul_dtype), params["b_logit"],
               emb_t, gum]
    in_specs += [
        pl.BlockSpec((H, 1), lambda b: (0, 0)),
        pl.BlockSpec((H, 1), lambda b: (0, 0)),
        pl.BlockSpec((nc, H), lambda b: (0, 0)),
        pl.BlockSpec((nc, 1), lambda b: (0, 0)),
        pl.BlockSpec((ed, nc), lambda b: (0, 0)),
        pl.BlockSpec((1, nc, T), lambda b: (b, 0, 0)),
    ]

    out_shape = (jax.ShapeDtypeStruct((B, nc, T), jnp.float32),
                 jax.ShapeDtypeStruct((B, ed, T), jnp.float32))
    out_specs = [pl.BlockSpec((1, nc, T), lambda b: (b, 0, 0)),
                 pl.BlockSpec((1, ed, T), lambda b: (b, 0, 0))]

    kernel = functools.partial(_encoder_kernel, tuple(conv_kernels),
                               tuple(paddings), float(temperature), matmul_dtype)

    logits, out = pl.pallas_call(
        kernel,
        out_shape=out_shape,
        grid_spec=pltpu.PrefetchScalarGridSpec(
            num_scalar_prefetch=0,
            grid=(B,),
            in_specs=in_specs,
            out_specs=out_specs,
        ),
        compiler_params=pltpu.CompilerParams(
            dimension_semantics=("parallel",),        # batch items are independent
            vmem_limit_bytes=_vmem_limit_bytes(Cin, T, H, nc, ed, conv_kernels)),
    )(*inputs)
    return logits, out


# --------------------------- parameter creation ------------------------------

def init_params(key, in_channels, h_channels, n_class, conv_kernels, embd_dim):
    ks = iter(jax.random.split(key, 16 + 4 * len(conv_kernels)))

    def u(k, shape, lo=-0.1, hi=0.1):
        return jax.random.uniform(k, shape, jnp.float32, lo, hi)

    params = {
        "w0": u(next(ks), (h_channels, in_channels)),   # Conv1d weight [C_out, C_in]
        "b0": u(next(ks), (h_channels, 1)),
        "layers": [],
        # real module inits LN to gamma=1/beta=0; perturb to exercise the affine path
        "g_ln": 1.0 + u(next(ks), (h_channels, 1)),
        "b_ln": u(next(ks), (h_channels, 1)),
    }
    for k_sz in conv_kernels:
        params["layers"].append((
            u(next(ks), (h_channels, h_channels, k_sz)),   # conv weight [C_out, C_in, k]
            u(next(ks), (h_channels, 1)),                  # conv bias
            1.0 + u(next(ks), (h_channels, 1)),            # LN gamma
            u(next(ks), (h_channels, 1)),                  # LN beta
        ))
    params["w_logit"] = u(next(ks), (n_class, h_channels))
    params["b_logit"] = u(next(ks), (n_class, 1))
    # nn.init.uniform_ -> U(0, 1)
    params["embeds"] = jax.random.uniform(next(ks), (n_class, embd_dim),
                                          jnp.float32, 0.0, 1.0)
    return params


# ------------------------------ pure-JAX reference ---------------------------

def _ref_ln(h, g, b):      # h [B, H, T], g/b [1, H, 1], LN over channel axis
    mean = jnp.mean(h, axis=1, keepdims=True)
    var = jnp.mean(jnp.square(h - mean), axis=1, keepdims=True)
    return (h - mean) * lax.rsqrt(var + LN_EPS) * g + b


def reference(x, params, gumbel_noise, conv_kernels, paddings, temperature):
    x = x.astype(jnp.float32)
    h = jnp.einsum("oc,bct->bot", params["w0"], x) + params["b0"][None]
    B, H, T = h.shape
    for (w, bias, g, be), k, p in zip(params["layers"], conv_kernels, paddings):
        hp = jnp.pad(h, ((0, 0), (0, 0), (p, p)))
        c = sum(jnp.einsum("oc,bct->bot", w[:, :, j], hp[:, :, j:j + T])
                for j in range(k))
        c = c + bias[None]
        c = _ref_ln(c, g[None], be[None])
        c = jnp.maximum(c, 0.0)
        h = h + c
    h = jnp.maximum(h, 0.0)
    h = _ref_ln(h, params["g_ln"][None], params["b_ln"][None])
    logits = jnp.einsum("oc,bct->bot", params["w_logit"], h) + params["b_logit"][None]
    y = (logits + gumbel_noise) / temperature
    idx = jnp.argmax(y, axis=1)                                     # [B, T]
    onehot = jax.nn.one_hot(idx, logits.shape[1], dtype=jnp.float32)  # [B, T, nc]
    out = jnp.einsum("btc,ce->bet", onehot, params["embeds"])
    return logits, out


# ---------------------------------- main -------------------------------------

if __name__ == "__main__":
    B, Cin, T = 2, 4, 128           # T multiple of 128 -> lane-dense stores
    H, n_class, embd_dim = 32, 8, 16
    conv_kernels = (3, 3)
    paddings = (1, 1)
    temperature = 0.5

    key = jax.random.PRNGKey(0)
    kx, kp, kg = jax.random.split(key, 3)
    x = jax.random.normal(kx, (B, Cin, T), jnp.float32)
    params = init_params(kp, Cin, H, n_class, conv_kernels, embd_dim)
    # gumbel noise used by F.gumbel_softmax (RNG done outside the kernel)
    gumbel = jax.random.gumbel(kg, (B, n_class, T), jnp.float32)

    logits, out = tv_conv_disc_ln_encoder(x, params, gumbel, conv_kernels,
                                          paddings, temperature)
    jax.block_until_ready((logits, out))

    assert logits.shape == (B, n_class, T)
    assert out.shape == (B, embd_dim, T)

    # logits vs f32 reference (loose tolerance: kernel matmuls run in bf16)
    lg_ref, _ = reference(x, params, gumbel, conv_kernels, paddings, temperature)
    assert np.allclose(np.asarray(logits), np.asarray(lg_ref),
                       atol=5e-2, rtol=5e-2), "logits mismatch"

    # discrete sample + embed path verified exactly against the kernel's OWN
    # logits (argmax could legitimately differ vs the f32 reference's logits).
    y = (logits + gumbel) / temperature
    idx = jnp.argmax(y, axis=1)
    oh = jax.nn.one_hot(idx, n_class, dtype=jnp.float32)            # [B, T, nc]
    out_exp = jnp.einsum("btc,ce->bet", oh, params["embeds"])
    assert np.allclose(np.asarray(out), np.asarray(out_exp), atol=1e-5), \
        "sample/embed mismatch"

    print("KERNEL_OK")
</pallas_src>

<mosaic_0001>
module attributes {stable_mosaic.version = 11 : i64} {
  func.func @_encoder_kernel(%arg0: i32, %arg1: memref<1x4x128xf32, #tpu.memory_space<vmem>>, %arg2: memref<32x4xbf16, #tpu.memory_space<vmem>>, %arg3: memref<32x1xf32, #tpu.memory_space<vmem>>, %arg4: memref<32x96xbf16, #tpu.memory_space<vmem>>, %arg5: memref<32x1xf32, #tpu.memory_space<vmem>>, %arg6: memref<32x1xf32, #tpu.memory_space<vmem>>, %arg7: memref<32x1xf32, #tpu.memory_space<vmem>>, %arg8: memref<32x96xbf16, #tpu.memory_space<vmem>>, %arg9: memref<32x1xf32, #tpu.memory_space<vmem>>, %arg10: memref<32x1xf32, #tpu.memory_space<vmem>>, %arg11: memref<32x1xf32, #tpu.memory_space<vmem>>, %arg12: memref<32x1xf32, #tpu.memory_space<vmem>>, %arg13: memref<32x1xf32, #tpu.memory_space<vmem>>, %arg14: memref<8x32xbf16, #tpu.memory_space<vmem>>, %arg15: memref<8x1xf32, #tpu.memory_space<vmem>>, %arg16: memref<16x8xf32, #tpu.memory_space<vmem>>, %arg17: memref<1x8x128xf32, #tpu.memory_space<vmem>>, %arg18: memref<1x8x128xf32, #tpu.memory_space<vmem>>, %arg19: memref<1x16x128xf32, #tpu.memory_space<vmem>>) attributes {dimension_semantics = [#tpu.dimension_semantics<parallel>], iteration_bounds = array<i64: 2>, scalar_prefetch = 0 : i64, scratch_operands = 0 : i64, tpu.core_type = #tpu.core_type<tc>, window_params = [{transform_indices = @transform_0, window_bounds = array<i64: 1, 4, 128>}, {pipeline_mode = #tpu.pipeline_mode<synchronous>, transform_indices = @transform_1, window_bounds = array<i64: 32, 4>}, {pipeline_mode = #tpu.pipeline_mode<synchronous>, transform_indices = @transform_2, window_bounds = array<i64: 32, 1>}, {pipeline_mode = #tpu.pipeline_mode<synchronous>, transform_indices = @transform_3, window_bounds = array<i64: 32, 96>}, {pipeline_mode = #tpu.pipeline_mode<synchronous>, transform_indices = @transform_4, window_bounds = array<i64: 32, 1>}, {pipeline_mode = #tpu.pipeline_mode<synchronous>, transform_indices = @transform_5, window_bounds = array<i64: 32, 1>}, {pipeline_mode = #tpu.pipeline_mode<synchronous>, transform_indices = @transform_6, window_bounds = array<i64: 32, 1>}, {pipeline_mode = #tpu.pipeline_mode<synchronous>, transform_indices = @transform_7, window_bounds = array<i64: 32, 96>}, {pipeline_mode = #tpu.pipeline_mode<synchronous>, transform_indices = @transform_8, window_bounds = array<i64: 32, 1>}, {pipeline_mode = #tpu.pipeline_mode<synchronous>, transform_indices = @transform_9, window_bounds = array<i64: 32, 1>}, {pipeline_mode = #tpu.pipeline_mode<synchronous>, transform_indices = @transform_10, window_bounds = array<i64: 32, 1>}, {pipeline_mode = #tpu.pipeline_mode<synchronous>, transform_indices = @transform_11, window_bounds = array<i64: 32, 1>}, {pipeline_mode = #tpu.pipeline_mode<synchronous>, transform_indices = @transform_12, window_bounds = array<i64: 32, 1>}, {pipeline_mode = #tpu.pipeline_mode<synchronous>, transform_indices = @transform_13, window_bounds = array<i64: 8, 32>}, {pipeline_mode = #tpu.pipeline_mode<synchronous>, transform_indices = @transform_14, window_bounds = array<i64: 8, 1>}, {pipeline_mode = #tpu.pipeline_mode<synchronous>, transform_indices = @transform_15, window_bounds = array<i64: 16, 8>}, {transform_indices = @transform_16, window_bounds = array<i64: 1, 8, 128>}, {transform_indices = @transform_17, window_bounds = array<i64: 1, 8, 128>}, {transform_indices = @transform_18, window_bounds = array<i64: 1, 16, 128>}]} {
    %c0 = arith.constant 0 : index
    %c0_0 = arith.constant 0 : index
    %c0_1 = arith.constant 0 : index
    %0 = vector.load %arg1[%c0, %c0_0, %c0_1] : memref<1x4x128xf32, #tpu.memory_space<vmem>>, vector<1x4x128xf32>
    %1 = vector.shape_cast %0 : vector<1x4x128xf32> to vector<4x128xf32>
    %c0_2 = arith.constant 0 : index
    %c0_3 = arith.constant 0 : index
    %2 = vector.load %arg2[%c0_2, %c0_3] : memref<32x4xbf16, #tpu.memory_space<vmem>>, vector<32x4xbf16>
    %3 = arith.truncf %1 : vector<4x128xf32> to vector<4x128xbf16>
    %cst = arith.constant dense<0.000000e+00> : vector<32x128xf32>
    %4 = tpu.matmul %2, %3, %cst {dimension_numbers = #tpu.dot_dimension_numbers<[1], [0], [0], [1], [0, 0, 1, 1], [], []>} : vector<32x4xbf16>, vector<4x128xbf16>, vector<32x128xf32> -> vector<32x128xf32>
    %c0_4 = arith.constant 0 : index
    %c0_5 = arith.constant 0 : index
    %5 = vector.load %arg3[%c0_4, %c0_5] : memref<32x1xf32, #tpu.memory_space<vmem>>, vector<32x1xf32>
    %6 = vector.broadcast %5 : vector<32x1xf32> to vector<32x128xf32>
    %7 = arith.addf %4, %6 : vector<32x128xf32>
    %8 = tpu.iota {dimensions = array<i32: 1>} : vector<32x128xi32>
    %c1_i32 = arith.constant 1 : i32
    %9 = tpu.dynamic_rotate %7 by %c1_i32 dim 1 : vector<32x128xf32>, i32 -> vector<32x128xf32>
    %c-1_i32 = arith.constant -1 : i32
    %10 = vector.broadcast %c-1_i32 : i32 to vector<32x128xi32>
    %11 = arith.addi %8, %10 : vector<32x128xi32>
    %c0_i32 = arith.constant 0 : i32
    %12 = vector.broadcast %c0_i32 : i32 to vector<32x128xi32>
    %13 = arith.cmpi sge, %11, %12 : vector<32x128xi32>
    %c-1_i32_6 = arith.constant -1 : i32
    %14 = vector.broadcast %c-1_i32_6 : i32 to vector<32x128xi32>
    %15 = arith.addi %8, %14 : vector<32x128xi32>
    %c128_i32 = arith.constant 128 : i32
    %16 = vector.broadcast %c128_i32 : i32 to vector<32x128xi32>
    %17 = arith.cmpi slt, %15, %16 : vector<32x128xi32>
    %18 = arith.andi %13, %17 : vector<32x128xi1>
    %cst_7 = arith.constant 0.000000e+00 : f32
    %19 = vector.broadcast %cst_7 : f32 to vector<32x128xf32>
    %20 = arith.select %18, %9, %19 : vector<32x128xi1>, vector<32x128xf32>
    %c127_i32 = arith.constant 127 : i32
    %21 = tpu.dynamic_rotate %7 by %c127_i32 dim 1 : vector<32x128xf32>, i32 -> vector<32x128xf32>
    %c1_i32_8 = arith.constant 1 : i32
    %22 = vector.broadcast %c1_i32_8 : i32 to vector<32x128xi32>
    %23 = arith.addi %8, %22 : vector<32x128xi32>
    %c0_i32_9 = arith.constant 0 : i32
    %24 = vector.broadcast %c0_i32_9 : i32 to vector<32x128xi32>
    %25 = arith.cmpi sge, %23, %24 : vector<32x128xi32>
    %c1_i32_10 = arith.constant 1 : i32
    %26 = vector.broadcast %c1_i32_10 : i32 to vector<32x128xi32>
    %27 = arith.addi %8, %26 : vector<32x128xi32>
    %c128_i32_11 = arith.constant 128 : i32
    %28 = vector.broadcast %c128_i32_11 : i32 to vector<32x128xi32>
    %29 = arith.cmpi slt, %27, %28 : vector<32x128xi32>
    %30 = arith.andi %25, %29 : vector<32x128xi1>
    %cst_12 = arith.constant 0.000000e+00 : f32
    %31 = vector.broadcast %cst_12 : f32 to vector<32x128xf32>
    %32 = arith.select %30, %21, %31 : vector<32x128xi1>, vector<32x128xf32>
    %33 = tpu.concatenate %20, %7, %32 in 0 : vector<32x128xf32>, vector<32x128xf32>, vector<32x128xf32> -> vector<96x128xf32>
    %c0_13 = arith.constant 0 : index
    %c0_14 = arith.constant 0 : index
    %34 = vector.load %arg4[%c0_13, %c0_14] : memref<32x96xbf16, #tpu.memory_space<vmem>>, vector<32x96xbf16>
    %35 = arith.truncf %33 : vector<96x128xf32> to vector<96x128xbf16>
    %cst_15 = arith.constant dense<0.000000e+00> : vector<32x128xf32>
    %36 = tpu.matmul %34, %35, %cst_15 {dimension_numbers = #tpu.dot_dimension_numbers<[1], [0], [0], [1], [0, 0, 1, 1], [], []>} : vector<32x96xbf16>, vector<96x128xbf16>, vector<32x128xf32> -> vector<32x128xf32>
    %c0_16 = arith.constant 0 : index
    %c0_17 = arith.constant 0 : index
    %37 = vector.load %arg5[%c0_16, %c0_17] : memref<32x1xf32, #tpu.memory_space<vmem>>, vector<32x1xf32>
    %38 = vector.broadcast %37 : vector<32x1xf32> to vector<32x128xf32>
    %39 = arith.addf %36, %38 : vector<32x128xf32>
    %c0_18 = arith.constant 0 : index
    %c0_19 = arith.constant 0 : index
    %40 = vector.load %arg6[%c0_18, %c0_19] : memref<32x1xf32, #tpu.memory_space<vmem>>, vector<32x1xf32>
    %c0_20 = arith.constant 0 : index
    %c0_21 = arith.constant 0 : index
    %41 = vector.load %arg7[%c0_20, %c0_21] : memref<32x1xf32, #tpu.memory_space<vmem>>, vector<32x1xf32>
    %cst_22 = arith.constant dense<0.000000e+00> : vector<128xf32>
    %42 = vector.multi_reduction <add>, %39, %cst_22 [0] : vector<32x128xf32> to vector<128xf32>
    %43 = vector.shape_cast %42 : vector<128xf32> to vector<1x128xf32>
    %cst_23 = arith.constant 3.200000e+01 : f32
    %44 = vector.broadcast %cst_23 : f32 to vector<1x128xf32>
    %45 = arith.divf %43, %44 : vector<1x128xf32>
    %46 = arith.mulf %39, %39 : vector<32x128xf32>
    %cst_24 = arith.constant dense<0.000000e+00> : vector<128xf32>
    %47 = vector.multi_reduction <add>, %46, %cst_24 [0] : vector<32x128xf32> to vector<128xf32>
    %48 = vector.shape_cast %47 : vector<128xf32> to vector<1x128xf32>
    %cst_25 = arith.constant 3.200000e+01 : f32
    %49 = vector.broadcast %cst_25 : f32 to vector<1x128xf32>
    %50 = arith.divf %48, %49 : vector<1x128xf32>
    %51 = arith.mulf %45, %45 : vector<1x128xf32>
    %52 = arith.subf %50, %51 : vector<1x128xf32>
    %cst_26 = arith.constant 0.000000e+00 : f32
    %53 = vector.broadcast %cst_26 : f32 to vector<1x128xf32>
    %54 = arith.maximumf %52, %53 : vector<1x128xf32>
    %55 = vector.broadcast %45 : vector<1x128xf32> to vector<32x128xf32>
    %56 = arith.subf %39, %55 : vector<32x128xf32>
    %cst_27 = arith.constant 9.99999974E-6 : f32
    %57 = vector.broadcast %cst_27 : f32 to vector<1x128xf32>
    %58 = arith.addf %54, %57 : vector<1x128xf32>
    %59 = math.rsqrt %58 : vector<1x128xf32>
    %60 = vector.broadcast %59 : vector<1x128xf32> to vector<32x128xf32>
    %61 = arith.mulf %56, %60 : vector<32x128xf32>
    %62 = vector.broadcast %40 : vector<32x1xf32> to vector<32x128xf32>
    %63 = arith.mulf %61, %62 : vector<32x128xf32>
    %64 = vector.broadcast %41 : vector<32x1xf32> to vector<32x128xf32>
    %65 = arith.addf %63, %64 : vector<32x128xf32>
    %cst_28 = arith.constant 0.000000e+00 : f32
    %66 = vector.broadcast %cst_28 : f32 to vector<32x128xf32>
    %67 = arith.maximumf %65, %66 : vector<32x128xf32>
    %68 = arith.addf %7, %67 : vector<32x128xf32>
    %c1_i32_29 = arith.constant 1 : i32
    %69 = tpu.dynamic_rotate %68 by %c1_i32_29 dim 1 : vector<32x128xf32>, i32 -> vector<32x128xf32>
    %c-1_i32_30 = arith.constant -1 : i32
    %70 = vector.broadcast %c-1_i32_30 : i32 to vector<32x128xi32>
    %71 = arith.addi %8, %70 : vector<32x128xi32>
    %c0_i32_31 = arith.constant 0 : i32
    %72 = vector.broadcast %c0_i32_31 : i32 to vector<32x128xi32>
    %73 = arith.cmpi sge, %71, %72 : vector<32x128xi32>
    %c-1_i32_32 = arith.constant -1 : i32
    %74 = vector.broadcast %c-1_i32_32 : i32 to vector<32x128xi32>
    %75 = arith.addi %8, %74 : vector<32x128xi32>
    %c128_i32_33 = arith.constant 128 : i32
    %76 = vector.broadcast %c128_i32_33 : i32 to vector<32x128xi32>
    %77 = arith.cmpi slt, %75, %76 : vector<32x128xi32>
    %78 = arith.andi %73, %77 : vector<32x128xi1>
    %cst_34 = arith.constant 0.000000e+00 : f32
    %79 = vector.broadcast %cst_34 : f32 to vector<32x128xf32>
    %80 = arith.select %78, %69, %79 : vector<32x128xi1>, vector<32x128xf32>
    %c127_i32_35 = arith.constant 127 : i32
    %81 = tpu.dynamic_rotate %68 by %c127_i32_35 dim 1 : vector<32x128xf32>, i32 -> vector<32x128xf32>
    %c1_i32_36 = arith.constant 1 : i32
    %82 = vector.broadcast %c1_i32_36 : i32 to vector<32x128xi32>
    %83 = arith.addi %8, %82 : vector<32x128xi32>
    %c0_i32_37 = arith.constant 0 : i32
    %84 = vector.broadcast %c0_i32_37 : i32 to vector<32x128xi32>
    %85 = arith.cmpi sge, %83, %84 : vector<32x128xi32>
    %c1_i32_38 = arith.constant 1 : i32
    %86 = vector.broadcast %c1_i32_38 : i32 to vector<32x128xi32>
    %87 = arith.addi %8, %86 : vector<32x128xi32>
    %c128_i32_39 = arith.constant 128 : i32
    %88 = vector.broadcast %c128_i32_39 : i32 to vector<32x128xi32>
    %89 = arith.cmpi slt, %87, %88 : vector<32x128xi32>
    %90 = arith.andi %85, %89 : vector<32x128xi1>
    %cst_40 = arith.constant 0.000000e+00 : f32
    %91 = vector.broadcast %cst_40 : f32 to vector<32x128xf32>
    %92 = arith.select %90, %81, %91 : vector<32x128xi1>, vector<32x128xf32>
    %93 = tpu.concatenate %80, %68, %92 in 0 : vector<32x128xf32>, vector<32x128xf32>, vector<32x128xf32> -> vector<96x128xf32>
    %c0_41 = arith.constant 0 : index
    %c0_42 = arith.constant 0 : index
    %94 = vector.load %arg8[%c0_41, %c0_42] : memref<32x96xbf16, #tpu.memory_space<vmem>>, vector<32x96xbf16>
    %95 = arith.truncf %93 : vector<96x128xf32> to vector<96x128xbf16>
    %cst_43 = arith.constant dense<0.000000e+00> : vector<32x128xf32>
    %96 = tpu.matmul %94, %95, %cst_43 {dimension_numbers = #tpu.dot_dimension_numbers<[1], [0], [0], [1], [0, 0, 1, 1], [], []>} : vector<32x96xbf16>, vector<96x128xbf16>, vector<32x128xf32> -> vector<32x128xf32>
    %c0_44 = arith.constant 0 : index
    %c0_45 = arith.constant 0 : index
    %97 = vector.load %arg9[%c0_44, %c0_45] : memref<32x1xf32, #tpu.memory_space<vmem>>, vector<32x1xf32>
    %98 = vector.broadcast %97 : vector<32x1xf32> to vector<32x128xf32>
    %99 = arith.addf %96, %98 : vector<32x128xf32>
    %c0_46 = arith.constant 0 : index
    %c0_47 = arith.constant 0 : index
    %100 = vector.load %arg10[%c0_46, %c0_47] : memref<32x1xf32, #tpu.memory_space<vmem>>, vector<32x1xf32>
    %c0_48 = arith.constant 0 : index
    %c0_49 = arith.constant 0 : index
    %101 = vector.load %arg11[%c0_48, %c0_49] : memref<32x1xf32, #tpu.memory_space<vmem>>, vector<32x1xf32>
    %cst_50 = arith.constant dense<0.000000e+00> : vector<128xf32>
    %102 = vector.multi_reduction <add>, %99, %cst_50 [0] : vector<32x128xf32> to vector<128xf32>
    %103 = vector.shape_cast %102 : vector<128xf32> to vector<1x128xf32>
    %cst_51 = arith.constant 3.200000e+01 : f32
    %104 = vector.broadcast %cst_51 : f32 to vector<1x128xf32>
    %105 = arith.divf %103, %104 : vector<1x128xf32>
    %106 = arith.mulf %99, %99 : vector<32x128xf32>
    %cst_52 = arith.constant dense<0.000000e+00> : vector<128xf32>
    %107 = vector.multi_reduction <add>, %106, %cst_52 [0] : vector<32x128xf32> to vector<128xf32>
    %108 = vector.shape_cast %107 : vector<128xf32> to vector<1x128xf32>
    %cst_53 = arith.constant 3.200000e+01 : f32
    %109 = vector.broadcast %cst_53 : f32 to vector<1x128xf32>
    %110 = arith.divf %108, %109 : vector<1x128xf32>
    %111 = arith.mulf %105, %105 : vector<1x128xf32>
    %112 = arith.subf %110, %111 : vector<1x128xf32>
    %cst_54 = arith.constant 0.000000e+00 : f32
    %113 = vector.broadcast %cst_54 : f32 to vector<1x128xf32>
    %114 = arith.maximumf %112, %113 : vector<1x128xf32>
    %115 = vector.broadcast %105 : vector<1x128xf32> to vector<32x128xf32>
    %116 = arith.subf %99, %115 : vector<32x128xf32>
    %cst_55 = arith.constant 9.99999974E-6 : f32
    %117 = vector.broadcast %cst_55 : f32 to vector<1x128xf32>
    %118 = arith.addf %114, %117 : vector<1x128xf32>
    %119 = math.rsqrt %118 : vector<1x128xf32>
    %120 = vector.broadcast %119 : vector<1x128xf32> to vector<32x128xf32>
    %121 = arith.mulf %116, %120 : vector<32x128xf32>
    %122 = vector.broadcast %100 : vector<32x1xf32> to vector<32x128xf32>
    %123 = arith.mulf %121, %122 : vector<32x128xf32>
    %124 = vector.broadcast %101 : vector<32x1xf32> to vector<32x128xf32>
    %125 = arith.addf %123, %124 : vector<32x128xf32>
    %cst_56 = arith.constant 0.000000e+00 : f32
    %126 = vector.broadcast %cst_56 : f32 to vector<32x128xf32>
    %127 = arith.maximumf %125, %126 : vector<32x128xf32>
    %128 = arith.addf %68, %127 : vector<32x128xf32>
    %cst_57 = arith.constant 0.000000e+00 : f32
    %129 = vector.broadcast %cst_57 : f32 to vector<32x128xf32>
    %130 = arith.maximumf %128, %129 : vector<32x128xf32>
    %c0_58 = arith.constant 0 : index
    %c0_59 = arith.constant 0 : index
    %131 = vector.load %arg12[%c0_58, %c0_59] : memref<32x1xf32, #tpu.memory_space<vmem>>, vector<32x1xf32>
    %c0_60 = arith.constant 0 : index
    %c0_61 = arith.constant 0 : index
    %132 = vector.load %arg13[%c0_60, %c0_61] : memref<32x1xf32, #tpu.memory_space<vmem>>, vector<32x1xf32>
    %cst_62 = arith.constant dense<0.000000e+00> : vector<128xf32>
    %133 = vector.multi_reduction <add>, %130, %cst_62 [0] : vector<32x128xf32> to vector<128xf32>
    %134 = vector.shape_cast %133 : vector<128xf32> to vector<1x128xf32>
    %cst_63 = arith.constant 3.200000e+01 : f32
    %135 = vector.broadcast %cst_63 : f32 to vector<1x128xf32>
    %136 = arith.divf %134, %135 : vector<1x128xf32>
    %137 = arith.mulf %130, %130 : vector<32x128xf32>
    %cst_64 = arith.constant dense<0.000000e+00> : vector<128xf32>
    %138 = vector.multi_reduction <add>, %137, %cst_64 [0] : vector<32x128xf32> to vector<128xf32>
    %139 = vector.shape_cast %138 : vector<128xf32> to vector<1x128xf32>
    %cst_65 = arith.constant 3.200000e+01 : f32
    %140 = vector.broadcast %cst_65 : f32 to vector<1x128xf32>
    %141 = arith.divf %139, %140 : vector<1x128xf32>
    %142 = arith.mulf %136, %136 : vector<1x128xf32>
    %143 = arith.subf %141, %142 : vector<1x128xf32>
    %cst_66 = arith.constant 0.000000e+00 : f32
    %144 = vector.broadcast %cst_66 : f32 to vector<1x128xf32>
    %145 = arith.maximumf %143, %144 : vector<1x128xf32>
    %146 = vector.broadcast %136 : vector<1x128xf32> to vector<32x128xf32>
    %147 = arith.subf %130, %146 : vector<32x128xf32>
    %cst_67 = arith.constant 9.99999974E-6 : f32
    %148 = vector.broadcast %cst_67 : f32 to vector<1x128xf32>
    %149 = arith.addf %145, %148 : vector<1x128xf32>
    %150 = math.rsqrt %149 : vector<1x128xf32>
    %151 = vector.broadcast %150 : vector<1x128xf32> to vector<32x128xf32>
    %152 = arith.mulf %147, %151 : vector<32x128xf32>
    %153 = vector.broadcast %131 : vector<32x1xf32> to vector<32x128xf32>
    %154 = arith.mulf %152, %153 : vector<32x128xf32>
    %155 = vector.broadcast %132 : vector<32x1xf32> to vector<32x128xf32>
    %156 = arith.addf %154, %155 : vector<32x128xf32>
    %c0_68 = arith.constant 0 : index
    %c0_69 = arith.constant 0 : index
    %157 = vector.load %arg14[%c0_68, %c0_69] : memref<8x32xbf16, #tpu.memory_space<vmem>>, vector<8x32xbf16>
    %158 = arith.truncf %156 : vector<32x128xf32> to vector<32x128xbf16>
    %cst_70 = arith.constant dense<0.000000e+00> : vector<8x128xf32>
    %159 = tpu.matmul %157, %158, %cst_70 {dimension_numbers = #tpu.dot_dimension_numbers<[1], [0], [0], [1], [0, 0, 1, 1], [], []>} : vector<8x32xbf16>, vector<32x128xbf16>, vector<8x128xf32> -> vector<8x128xf32>
    %c0_71 = arith.constant 0 : index
    %c0_72 = arith.constant 0 : index
    %160 = vector.load %arg15[%c0_71, %c0_72] : memref<8x1xf32, #tpu.memory_space<vmem>>, vector<8x1xf32>
    %161 = vector.broadcast %160 : vector<8x1xf32> to vector<8x128xf32>
    %162 = arith.addf %159, %161 : vector<8x128xf32>
    %c0_73 = arith.constant 0 : index
    %c0_74 = arith.constant 0 : index
    %c0_75 = arith.constant 0 : index
    %163 = vector.load %arg18[%c0_73, %c0_74, %c0_75] : memref<1x8x128xf32, #tpu.memory_space<vmem>>, vector<1x8x128xf32>
    %164 = vector.shape_cast %163 : vector<1x8x128xf32> to vector<8x128xf32>
    %165 = vector.shape_cast %162 : vector<8x128xf32> to vector<1x8x128xf32>
    tpu.vector_store %arg18[%c0_73, %c0_74, %c0_75], %165 {strides = array<i32>} : memref<1x8x128xf32, #tpu.memory_space<vmem>>, vector<1x8x128xf32>,
    %c0_76 = arith.constant 0 : index
    %c0_77 = arith.constant 0 : index
    %c0_78 = arith.constant 0 : index
    %166 = vector.load %arg17[%c0_76, %c0_77, %c0_78] : memref<1x8x128xf32, #tpu.memory_space<vmem>>, vector<1x8x128xf32>
    %167 = vector.shape_cast %166 : vector<1x8x128xf32> to vector<8x128xf32>
    %168 = arith.addf %162, %167 : vector<8x128xf32>
    %cst_79 = arith.constant 2.000000e+00 : f32
    %169 = vector.broadcast %cst_79 : f32 to vector<8x128xf32>
    %170 = arith.mulf %168, %169 : vector<8x128xf32>
    %cst_80 = arith.constant dense<0xFF800000> : vector<128xf32>
    %171 = vector.multi_reduction <maximumf>, %170, %cst_80 [0] : vector<8x128xf32> to vector<128xf32>
    %172 = vector.shape_cast %171 : vector<128xf32> to vector<1x128xf32>
    %173 = tpu.iota {dimensions = array<i32: 0>} : vector<8x128xi32>
    %174 = vector.broadcast %172 : vector<1x128xf32> to vector<8x128xf32>
    %175 = arith.cmpf oeq, %170, %174 : vector<8x128xf32>
    %c8_i32 = arith.constant 8 : i32
    %176 = vector.broadcast %c8_i32 : i32 to vector<8x128xi32>
    %177 = arith.select %175, %173, %176 : vector<8x128xi1>, vector<8x128xi32>
    %cst_81 = arith.constant dense<2147483647> : vector<128xi32>
    %178 = vector.multi_reduction <minsi>, %177, %cst_81 [0] : vector<8x128xi32> to vector<128xi32>
    %179 = vector.shape_cast %178 : vector<128xi32> to vector<1x128xi32>
    %180 = vector.broadcast %179 : vector<1x128xi32> to vector<8x128xi32>
    %181 = arith.cmpi eq, %173, %180 : vector<8x128xi32>
    %182 = arith.extui %181 : vector<8x128xi1> to vector<8x128xi32>
    %183 = arith.sitofp %182 : vector<8x128xi32> to vector<8x128xf32>
    %c0_82 = arith.constant 0 : index
    %c0_83 = arith.constant 0 : index
    %184 = vector.load %arg16[%c0_82, %c0_83] : memref<16x8xf32, #tpu.memory_space<vmem>>, vector<16x8xf32>
    %cst_84 = arith.constant dense<0.000000e+00> : vector<16x128xf32>
    %185 = tpu.matmul %184, %183, %cst_84 {dimension_numbers = #tpu.dot_dimension_numbers<[1], [0], [0], [1], [0, 0, 1, 1], [], []>} : vector<16x8xf32>, vector<8x128xf32>, vector<16x128xf32> -> vector<16x128xf32>
    %c0_85 = arith.constant 0 : index
    %c0_86 = arith.constant 0 : index
    %c0_87 = arith.constant 0 : index
    %186 = vector.load %arg19[%c0_85, %c0_86, %c0_87] : memref<1x16x128xf32, #tpu.memory_space<vmem>>, vector<1x16x128xf32>
    %187 = vector.shape_cast %186 : vector<1x16x128xf32> to vector<16x128xf32>
    %188 = vector.shape_cast %185 : vector<16x128xf32> to vector<1x16x128xf32>
    tpu.vector_store %arg19[%c0_85, %c0_86, %c0_87], %188 {strides = array<i32>} : memref<1x16x128xf32, #tpu.memory_space<vmem>>, vector<1x16x128xf32>,
    return
  }
  func.func @transform_0(%arg0: i32) -> (i32, i32, i32) {
    %c0_i32 = arith.constant 0 : i32
    %c0_i32_0 = arith.constant 0 : i32
    %c0_i32_1 = arith.constant 0 : i32
    return %arg0, %c0_i32, %c0_i32_0 : i32, i32, i32
  }
  func.func @transform_1(%arg0: i32) -> (i32, i32) {
    %c0_i32 = arith.constant 0 : i32
    %c0_i32_0 = arith.constant 0 : i32
    %c0_i32_1 = arith.constant 0 : i32
    return %c0_i32, %c0_i32_0 : i32, i32
  }
  func.func @transform_2(%arg0: i32) -> (i32, i32) {
    %c0_i32 = arith.constant 0 : i32
    %c0_i32_0 = arith.constant 0 : i32
    %c0_i32_1 = arith.constant 0 : i32
    return %c0_i32, %c0_i32_0 : i32, i32
  }
  func.func @transform_3(%arg0: i32) -> (i32, i32) {
    %c0_i32 = arith.constant 0 : i32
    %c0_i32_0 = arith.constant 0 : i32
    %c0_i32_1 = arith.constant 0 : i32
    return %c0_i32, %c0_i32_0 : i32, i32
  }
  func.func @transform_4(%arg0: i32) -> (i32, i32) {
    %c0_i32 = arith.constant 0 : i32
    %c0_i32_0 = arith.constant 0 : i32
    %c0_i32_1 = arith.constant 0 : i32
    return %c0_i32, %c0_i32_0 : i32, i32
  }
  func.func @transform_5(%arg0: i32) -> (i32, i32) {
    %c0_i32 = arith.constant 0 : i32
    %c0_i32_0 = arith.constant 0 : i32
    %c0_i32_1 = arith.constant 0 : i32
    return %c0_i32, %c0_i32_0 : i32, i32
  }
  func.func @transform_6(%arg0: i32) -> (i32, i32) {
    %c0_i32 = arith.constant 0 : i32
    %c0_i32_0 = arith.constant 0 : i32
    %c0_i32_1 = arith.constant 0 : i32
    return %c0_i32, %c0_i32_0 : i32, i32
  }
  func.func @transform_7(%arg0: i32) -> (i32, i32) {
    %c0_i32 = arith.constant 0 : i32
    %c0_i32_0 = arith.constant 0 : i32
    %c0_i32_1 = arith.constant 0 : i32
    return %c0_i32, %c0_i32_0 : i32, i32
  }
  func.func @transform_8(%arg0: i32) -> (i32, i32) {
    %c0_i32 = arith.constant 0 : i32
    %c0_i32_0 = arith.constant 0 : i32
    %c0_i32_1 = arith.constant 0 : i32
    return %c0_i32, %c0_i32_0 : i32, i32
  }
  func.func @transform_9(%arg0: i32) -> (i32, i32) {
    %c0_i32 = arith.constant 0 : i32
    %c0_i32_0 = arith.constant 0 : i32
    %c0_i32_1 = arith.constant 0 : i32
    return %c0_i32, %c0_i32_0 : i32, i32
  }
  func.func @transform_10(%arg0: i32) -> (i32, i32) {
    %c0_i32 = arith.constant 0 : i32
    %c0_i32_0 = arith.constant 0 : i32
    %c0_i32_1 = arith.constant 0 : i32
    return %c0_i32, %c0_i32_0 : i32, i32
  }
  func.func @transform_11(%arg0: i32) -> (i32, i32) {
    %c0_i32 = arith.constant 0 : i32
    %c0_i32_0 = arith.constant 0 : i32
    %c0_i32_1 = arith.constant 0 : i32
    return %c0_i32, %c0_i32_0 : i32, i32
  }
  func.func @transform_12(%arg0: i32) -> (i32, i32) {
    %c0_i32 = arith.constant 0 : i32
    %c0_i32_0 = arith.constant 0 : i32
    %c0_i32_1 = arith.constant 0 : i32
    return %c0_i32, %c0_i32_0 : i32, i32
  }
  func.func @transform_13(%arg0: i32) -> (i32, i32) {
    %c0_i32 = arith.constant 0 : i32
    %c0_i32_0 = arith.constant 0 : i32
    %c0_i32_1 = arith.constant 0 : i32
    return %c0_i32, %c0_i32_0 : i32, i32
  }
  func.func @transform_14(%arg0: i32) -> (i32, i32) {
    %c0_i32 = arith.constant 0 : i32
    %c0_i32_0 = arith.constant 0 : i32
    %c0_i32_1 = arith.constant 0 : i32
    return %c0_i32, %c0_i32_0 : i32, i32
  }
  func.func @transform_15(%arg0: i32) -> (i32, i32) {
    %c0_i32 = arith.constant 0 : i32
    %c0_i32_0 = arith.constant 0 : i32
    %c0_i32_1 = arith.constant 0 : i32
    return %c0_i32, %c0_i32_0 : i32, i32
  }
  func.func @transform_16(%arg0: i32) -> (i32, i32, i32) {
    %c0_i32 = arith.constant 0 : i32
    %c0_i32_0 = arith.constant 0 : i32
    %c0_i32_1 = arith.constant 0 : i32
    return %arg0, %c0_i32, %c0_i32_0 : i32, i32, i32
  }
  func.func @transform_17(%arg0: i32) -> (i32, i32, i32) {
    %c0_i32 = arith.constant 0 : i32
    %c0_i32_0 = arith.constant 0 : i32
    %c0_i32_1 = arith.constant 0 : i32
    return %arg0, %c0_i32, %c0_i32_0 : i32, i32, i32
  }
  func.func @transform_18(%arg0: i32) -> (i32, i32, i32) {
    %c0_i32 = arith.constant 0 : i32
    %c0_i32_0 = arith.constant 0 : i32
    %c0_i32_1 = arith.constant 0 : i32
    return %arg0, %c0_i32, %c0_i32_0 : i32, i32, i32
  }
}

</mosaic_0001>

<bundles_post_ra>
// kernel: tpu_custom_call.1
= control target key start
LH: loop header
LB: loop body
LE: loop exit
PB: predicated region body
PF: predicated region fallthrough
CT: control target
= control target key end

     0   :  { %s2382_s0 = inlined_call_operand.vmem [shape: f32[2,4,128], index: 0, kind: input, shape index: {}]   ;;  %s2383_s1 = inlined_call_operand.vmem [shape: bf16[32,4], index: 1, kind: input, shape index: {}]   ;;  %s2384_s2 = inlined_call_operand.vmem [shape: f32[32,1], index: 2, kind: input, shape index: {}]   ;;  %s2385_s3 = inlined_call_operand.vmem [shape: bf16[32,96], index: 3, kind: input, shape index: {}]   ;;  %s2386_s4 = inlined_call_operand.vmem [shape: f32[32,1], index: 4, kind: input, shape index: {}]   ;;  %s2387_s5 = inlined_call_operand.vmem [shape: f32[32,1], index: 5, kind: input, shape index: {}]   ;;  %s2388_s6 = inlined_call_operand.vmem [shape: f32[32,1], index: 6, kind: input, shape index: {}]   ;;  %s2389_s7 = inlined_call_operand.vmem [shape: bf16[32,96], index: 7, kind: input, shape index: {}]   ;;  %s2390_s8 = inlined_call_operand.vmem [shape: f32[32,1], index: 8, kind: input, shape index: {}]   ;;  %s2391_s9 = inlined_call_operand.vmem [shape: f32[32,1], index: 9, kind: input, shape index: {}]   ;;  %s2392_s10 = inlined_call_operand.vmem [shape: f32[32,1], index: 10, kind: input, shape index: {}]   ;;  %s2393_s11 = inlined_call_operand.vmem [shape: f32[32,1], index: 11, kind: input, shape index: {}]   ;;  %s2394_s12 = inlined_call_operand.vmem [shape: f32[32,1], index: 12, kind: input, shape index: {}]   ;;  %s2395_s13 = inlined_call_operand.vmem [shape: bf16[8,32], index: 13, kind: input, shape index: {}]   ;;  %s2396_s14 = inlined_call_operand.vmem [shape: f32[8,1], index: 14, kind: input, shape index: {}]   ;;  %s2397_s15 = inlined_call_operand.vmem [shape: f32[16,8], index: 15, kind: input, shape index: {}]   ;;  %s2398_s16 = inlined_call_operand.vmem [shape: f32[2,8,128], index: 16, kind: input, shape index: {}]   ;;  %s2399_s17 = inlined_call_operand.hbm [shape: f32[2,8,128], index: 17, kind: output, shape index: {0}]   ;;  %s2400_s18 = inlined_call_operand.hbm [shape: f32[2,16,128], index: 18, kind: output, shape index: {1}]  }
   0x1   :  { %2414 = sst [smem:[#allocation14_spill]] %s2382_s0 }
   0x2   :  { %2415 = sst [smem:[#allocation15_spill]] %s2383_s1 }
   0x3   :  { %2416 = sst [smem:[#allocation16_spill]] %s2384_s2 }
   0x4   :  { %2417 = sst [smem:[#allocation17_spill]] %s2385_s3 }
   0x5   :  { %2418 = sst [smem:[#allocation18_spill]] %s2386_s4 }
   0x6   :  { %2419 = sst [smem:[#allocation19_spill]] %s2400_s18 }
   0x7   :  { %24 = vsyncpa [#allocation3], 0 }
   0x8   :  { %26 = vsyncpa [#allocation3 + $0x1], 0 }
   0x9   :  { %27 = vsyncpa [#allocation5], 0 }
   0xa   :  { %29 = vsyncpa [#allocation5 + $0x1], 0  ;;  %s2001_s27 = smov 0   ;;  %s2003_s28 = smov 0  }
   0xb   :  { %s2005_s29 = smov 0   ;;  %s2007_s30 = smov 0  }
   0xc LB: > { %2420 = sst [smem:[#allocation8_spill]] %s1882_s27  ;;  %s2022_s0 = sadd.s32 4294967295, %s1894_s30   ;;  %s1894_s30 = sphi %s2007_s30, %s2443_s30   ;;  %s1890_s29 = sphi %s2005_s29, %s2445_s29   ;;  %s1886_s28 = sphi %s2003_s28, %s2447_s28   ;;  %s1882_s27 = sphi %s2001_s27, %s2446_s27  }
   0xd   : > { %2421 = sst [smem:[#allocation9_spill]] %s1890_s29  ;;  %s1560_s19 = sadd.s32 4294967294, %s1894_s30  }
   0xe   : > { %2422 = sst [smem:[#allocation10_spill]] %s1894_s30  ;;  %s2026_s1 = sadd.s32 1, %s1894_s30  }
   0xf   : > { %2423 = sst [smem:[#allocation11_spill]] %s2026_s1  ;;  %s409_s20 = sadd.s32 1, %s1890_s29 }
  0x10   : > { %s406_s21 = ssub.s32 %s1894_s30, %s2026_s1  ;;  %p419_p0 = scmp.ne.s32.totalorder %s1890_s29, %s1886_s28 }
  0x11   : > { %p407_p1 = scmp.eq.s32.totalorder %s406_s21, 0  ;;  %p420_p2 = scmp.eq.s32.totalorder %s2022_s0, 1 }
  0x12   : > { %p425_p3 = scmp.ne.s32.totalorder %s1886_s28, %s1882_s27  ;;  %p426_p4 = scmp.eq.s32.totalorder %s1560_s19, 1 }
  0x13   : > { %s2037_s22 = scalar_select %p407_p1, %s1890_s29, %s409_s20  }
  0x14   : > { %p2039_p5 = por %p420_p2, %p419_p0  ;;  %p2043_p6 = por %p426_p4, %p425_p3 }
  0x15   : > { %2424 = sst [smem:[#allocation12_spill]] %s2037_s22  ;;  %p1563_p7 = scmp.ge.s32.totalorder %s1894_s30, 1 }
  0x16   : > { %s2426_s23 = scalar_select %p2043_p6, 1, 0 }
  0x17   : > { %p529_p8 = scmp.lt.s32.totalorder %s1894_s30, 3 }
  0x18   : > { %2427 = sst [smem:[#allocation13_spill]] %s2426_s23 }
  0x19   : > { %p530_p9 = pnand %p1563_p7, %p529_p8 }
  0x1a   : > { %p591_p10 = scmp.lt.s32.totalorder (!%p530_p9), %s2022_s0, 1  ;;  %s2428_s26 = sld [smem:[#allocation15_spill]] (!%p530_p9)  ;;  %vm640_vm0 = vcmask (!%p530_p9), 31744   ;;  %vm647_vm1 = vcmask (!%p530_p9), 1041408   ;;  %v1896_v3 = vmov (!%p530_p9), 0   ;;  %v835_v28 = vld [vmem:[%s2387_s5 + $0x8] sm:$0xff] (!%p530_p9)  ;;  %v700_v37 = vlaneseq (!%p530_p9) }
  0x1b   : > { %533 = sbr.rel (%p530_p9) target bundleno = 1615 (0x64f), region = 88  ;;  %s2429_s22 = sld [smem:[#allocation16_spill]] (!%p530_p9)  ;;  %1746 = vset.pattern.permute.xlu0 (!%p530_p9), %v1896_v3  ;;  %1747 = vset.pattern.permute.xlu1 (!%p530_p9), %v1896_v3  ;;  %vm778_vm2 = vcmask (!%p530_p9), 785408   ;;  %v834_v30 = vld [vmem:[%s2387_s5] sm:$0xff] (!%p530_p9)  ;;  %v839_v31 = vld [vmem:[%s2388_s6 + $0x8] sm:$0xff] (!%p530_p9)  ;;  %v837_v33 = vld [vmem:[%s2387_s5 + $0x18] sm:$0xff] (!%p530_p9) }
  0x1c   : > { %s2430_s29 = sld [smem:[#allocation14_spill]] (!%p530_p9)  ;;  %s2412_s18 = smov (!%p530_p9), 1   ;;  %v838_v32 = vld [vmem:[%s2388_s6] sm:$0xff] (!%p530_p9)  ;;  %v836_v34 = vld [vmem:[%s2387_s5 + $0x10] sm:$0xff] (!%p530_p9)  ;;  %v841_v35 = vld [vmem:[%s2388_s6 + $0x18] sm:$0xff] (!%p530_p9)  ;;  %v701_v38 = vand.u32 (!%p530_p9), 127, %v700_v37 }
  0x1d   : > { %s2410_s27 = smov (!%p530_p9), 127   ;;  %s2431_s4 = sld [smem:[#allocation18_spill]] (!%p530_p9)  ;;  %v840_v36 = vld [vmem:[%s2388_s6 + $0x10] sm:$0xff] (!%p530_p9)  ;;  %v1793_v46 = vld [vmem:[%s2389_s7 + $0x8] sm:$0xff] (!%p530_p9)   ;;  %vm1900_vm7 = vmmov (!%p530_p9), 0   ;;  %vm1266_vm8 = vcmask (!%p530_p9), 261120  }
  0x1e   : > { %s2432_s3 = sld [smem:[#allocation17_spill]] (!%p530_p9)  ;;  %v710_v39 = vadd.s32 (!%p530_p9), 4294967295, %v701_v38  ;;  %v726_v50 = vadd.s32 (!%p530_p9), 1, %v701_v38  ;;  %s2438_s23 = smov (!%p530_p9), 127   ;;  %vm1338_vm9 = vcmask (!%p530_p9), 64512  }
  0x1f   : > { %s2292_s30 = sand.u32 (!%p530_p9), 1, %s1886_s28  }
  0x20   : > { %v1788_v0 = vld [vmem:[%s2428_s26] sm:$0xff] (!%p530_p9)   ;;  %v1789_v9 = vld [vmem:[%s2428_s26 + $0x8] sm:$0xff] (!%p530_p9)   ;;  %vm711_vm3 = vcmp.ge.s32.totalorder (!%p530_p9), %v710_v39, 0  ;;  %vm728_vm5 = vcmp.lt.s32.totalorder (!%p530_p9), %v726_v50, 128  ;;  %s1423_s21 = scalar_lea.sflag (!%p530_p9), [#allocation3], %s2292_s30 }
  0x21   : > { %v606_v1 = vld [vmem:[%s2429_s22] sm:$0xff] (!%p530_p9)  ;;  %v608_v2 = vld [vmem:[%s2429_s22 + $0x10] sm:$0xff] (!%p530_p9)  ;;  %1644 = vmatprep.mubr.msk.bf16.mxu0 (!%p530_p9), %vm640_vm0, %v1788_v0  ;;  %v607_v4 = vld [vmem:[%s2429_s22 + $0x8] sm:$0xff] (!%p530_p9) }
  0x22   : > { %s2054_s19 = scalar_select %p591_p10, %s2022_s0, 1  ;;  %612 = vperm.xlu0 %1746, %v606_v1   ;;  %v609_v5 = vld [vmem:[%s2429_s22 + $0x18] sm:$0xff]  ;;  %622 = vperm.xlu1 %1747, %v608_v2   ;;  %vm2134_vm4 = vmpackc.low %vm711_vm3, %vm711_vm3 }
  0x23   : > { %v745_v24 = vld [vmem:[%s2431_s4 + $0x8] sm:$0xff]  ;;  %v744_v25 = vld [vmem:[%s2431_s4] sm:$0xff]  ;;  %v747_v26 = vld [vmem:[%s2431_s4 + $0x18] sm:$0xff] }
  0x24   : > { %s1566_s25 = sshll.u32 %s2054_s19, 2  ;;  %v746_v27 = vld [vmem:[%s2431_s4 + $0x10] sm:$0xff]  ;;  %v1790_v29 = vld [vmem:[%s2432_s3] sm:$0xff]   ;;  %vm2150_vm6 = vmpackc.low %vm728_vm5, %vm728_vm5  ;;  %s1567_s24 = sshll.u32 %s2054_s19, 3 }
  0x25   : > { %s594_s1 = scalar_lea.vmem %s2430_s29, %s1566_s25  ;;  %1660 = vmatprep.mubr.msk.bf16.mxu1 %vm778_vm2, %v1790_v29  ;;  %v1791_v61 = vld [vmem:[%s2432_s3 + $0x8] sm:$0xff]   ;;  %s1564_s25 = sshll.u32 %s2292_s30, 3 }
  0x26   : > { %v600_v6 = vld [vmem:[%s594_s1] sm:$0xf]  ;;  %617 = vperm.xlu0 %1746, %v607_v4   ;;  %627 = vperm.xlu1 %1747, %v609_v5   ;;  %s598_s29 = scalar_lea.vmem %s2398_s16, %s1567_s24  ;;  %s2299_s1 = scalar_lea.vmem [#allocation2], %s1564_s25 }
  0x27   : > { %v605_v7 = vpack.c.bf16 %v600_v6, %v600_v6  ;;  %s1902_s19 = smov [#allocation2]  }
  0x29   : > { %1693 = vmatprep.subr.msk.bf16.mxu0 %vm647_vm1, %v605_v7  ;;  %v649_v8 = vsel %vm647_vm1, %v605_v7, 0 }
  0x2a   : > { %1643 = vmatpush3.bf16.msra.mxu0 %v649_v8 }
  0x2d   : > { %1645 = vmatmul.mubr.msk.bf16.vlgmr.msra.gmra.mrb[0].mxu0 %vm640_vm0, %v1789_v9 }
  0xa1   : > { %v623_v10 = vpop.permute.xlu1 %622  ;;  %v613_v11 = vpop.permute.xlu0 %612 }
  0xa5   : > { %v628_v13 = vpop.permute.xlu1 %627  ;;  %v618_v16 = vpop.permute.xlu0 %617 }
 0x100   : > { %v1646_v12 = vpop.f32.mrb[0].mxu0 }
 0x101   : > { %v685_v14 = vpop.f32.mrb[1].mxu0  ;;  %v2077_v17 = vadd.f32 %v1646_v12, %v623_v10 }
 0x102   : > { %v1647_v15 = vpop.f32.mrb[2].mxu0  ;;  %v2081_v20 = vadd.f32 %v685_v14, %v613_v11 }
 0x103   : > { %v2079_v18 = vadd.f32 %v1647_v15, %v628_v13  ;;  %v688_v19 = vpop.f32.mrb[3].mxu0 }
 0x104   : > { %v2083_v21 = vadd.f32 %v688_v19, %v618_v16 }
 0x105   : > { %v1753_v22 = vpack.i.bf16 %v2079_v18, %v2077_v17  ;;  %v741_v54 = vpack.c.bf16 %v2079_v18, %v2077_v17 }
 0x106   : > { %v1748_v23 = vpack.i.bf16 %v2083_v21, %v2081_v20  ;;  %v740_v49 = vpack.c.bf16 %v2083_v21, %v2081_v20 }
 0x107   : > { %1754 = vrot.lane.b32.xlu1 %v1753_v22, %s2412_s18 }
 0x108   : > { %1749 = vrot.lane.b32.xlu0 %v1748_v23, %s2412_s18  ;;  %s1804_s18 = sshll.u32 %s1902_s19, 4  ;;  %s1805_s18 = int_to_ptr.vmem [resolvable:$false] %s1804_s18 }
 0x109   : > { %s1806_s3 = scalar_lea.vmem %s1805_s18, 256 }
 0x10b   : > { %1764 = vrot.lane.b32.xlu1 %v1753_v22, %s2410_s27 }
 0x10c   : > { %1759 = vrot.lane.b32.xlu0 %v1748_v23, %s2410_s27  ;;  %s2437_s27 = smov 1  }
 0x10f   : > { %755 = vperm.xlu1 %1747, %v745_v24  }
 0x110   : > { %750 = vperm.xlu0 %1746, %v744_v25  }
 0x113   : > { %765 = vperm.xlu1 %1747, %v747_v26  }
 0x114   : > { %760 = vperm.xlu0 %1746, %v746_v27  }
 0x117   : > { %887 = vperm.xlu1 %1747, %v835_v28  }
 0x118   : > { %882 = vperm.xlu0 %1746, %v834_v30  }
 0x11b   : > { %911 = vperm.xlu1 %1747, %v839_v31  }
 0x11c   : > { %906 = vperm.xlu0 %1746, %v838_v32  }
 0x11f   : > { %897 = vperm.xlu1 %1747, %v837_v33  }
 0x120   : > { %892 = vperm.xlu0 %1746, %v836_v34  }
 0x123   : > { %921 = vperm.xlu1 %1747, %v841_v35  }
 0x124   : > { %916 = vperm.xlu0 %1746, %v840_v36  }
 0x179   : > { %v1755_v40 = vpop.permute.xlu1 %1754 }
 0x17a   : > { %v1750_v41 = vpop.permute.xlu0 %1749  ;;  %v1757_v42 = vunpack.i.h.bf16 %v1755_v40  ;;  %v1756_v43 = vunpack.i.l.bf16 %v1755_v40 }
 0x17b   : > { %v1752_v44 = vunpack.i.h.bf16 %v1750_v41  ;;  %v1751_v45 = vunpack.i.l.bf16 %v1750_v41 }
 0x17c   : > { %v1578_v48 = vpack.c.bf16 %v1757_v42, %v1756_v43 }
 0x17d   : > { %v1575_v47 = vpack.c.bf16 %v1752_v44, %v1751_v45  ;;  %v1765_v55 = vpop.permute.xlu1 %1764 }
 0x17e   : > { %v1760_v51 = vpop.permute.xlu0 %1759  ;;  %v1767_v57 = vunpack.i.h.bf16 %v1765_v55  ;;  %v1766_v58 = vunpack.i.l.bf16 %v1765_v55 }
 0x17f   : > { %1648 = vmatprep.subr.msk.bf16.mxu1 %vm2134_vm4, %v1575_v47  ;;  %v1762_v52 = vunpack.i.h.bf16 %v1760_v51  ;;  %v1761_v53 = vunpack.i.l.bf16 %v1760_v51 }
 0x180   : > { %1649 = vmatpush3.bf16.msk.msra.mxu1 %vm2134_vm4, %v1575_v47  ;;  %v1584_v60 = vpack.c.bf16 %v1767_v57, %v1766_v58 }
 0x181   : > { %1650 = vmatprep.subr.msk.bf16.mxu1 %vm2134_vm4, %v1578_v48  ;;  %v1581_v59 = vpack.c.bf16 %v1762_v52, %v1761_v53 }
 0x184   : > { %1651 = vmatpush3.bf16.msk.msra.mxu1 %vm2134_vm4, %v1578_v48 }
 0x185   : > { %1652 = vmatprep.subr.bf16.mxu1 %v740_v49 }
 0x188   : > { %1653 = vmatpush3.bf16.msra.mxu1 %v740_v49 }
 0x189   : > { %1654 = vmatprep.subr.bf16.mxu1 %v741_v54 }
 0x18c   : > { %1655 = vmatpush3.bf16.msra.mxu1 %v741_v54 }
 0x18d   : > { %1656 = vmatprep.subr.msk.bf16.mxu1 %vm2150_vm6, %v1581_v59 }
 0x18e   : > { %v756_v63 = vpop.permute.xlu1 %755 }
 0x18f   : > { %v751_v62 = vpop.permute.xlu0 %750 }
 0x190   : > { %1657 = vmatpush3.bf16.msk.msra.mxu1 %vm2150_vm6, %v1581_v59 }
 0x191   : > { %1658 = vmatprep.subr.msk.bf16.mxu1 %vm2150_vm6, %v1584_v60 }
 0x192   : > { %v766_v8 = vpop.permute.xlu1 %765 }
 0x193   : > { %v761_v4 = vpop.permute.xlu0 %760 }
 0x194   : > { %1659 = vmatpush3.bf16.msk.msra.mxu1 %vm2150_vm6, %v1584_v60 }
 0x196   : > { %v888_v45 = vpop.permute.xlu1 %887 }
 0x197   : > { %1661 = vmatmul.mubr.msk.bf16.vlgmr.msra.gmra.mrb[0].mxu1 %vm778_vm2, %v1791_v61  ;;  %v883_v47 = vpop.permute.xlu0 %882 }
 0x19a   : > { %v912_v50 = vpop.permute.xlu1 %911 }
 0x19b   : > { %v907_v51 = vpop.permute.xlu0 %906 }
 0x19e   : > { %v898_v52 = vpop.permute.xlu1 %897 }
 0x19f   : > { %v893_v53 = vpop.permute.xlu0 %892 }
 0x26a   : > { %v1662_v0 = vpop.f32.mrb[0].mxu1 }
 0x26b   : > { %v819_v1 = vpop.f32.mrb[1].mxu1  ;;  %v828_v6 = vadd.f32 %v1662_v0, %v761_v4  ;;  %v922_v0 = vpop.permute.xlu1 %921 }
 0x26c   : > { %v820_v2 = vadd.f32 %v819_v1, %v751_v62  ;;  %v1663_v3 = vpop.f32.mrb[2].mxu1  ;;  %v917_v1 = vpop.permute.xlu0 %916 }
 0x26d   : > { %v822_v5 = vpop.f32.mrb[3].mxu1  ;;  %v831_v10 = vadd.f32 %v1663_v3, %v766_v8  ;;  %v855_v13 = vmul.f32 %v828_v6, %v828_v6 }
 0x26e   : > { %v823_v7 = vadd.f32 %v822_v5, %v756_v63  ;;  %v853_v9 = vmul.f32 %v820_v2, %v820_v2 }
 0x26f   : > { %v856_v16 = vmul.f32 %v831_v10, %v831_v10 }
 0x270   : > { %v842_v11 = vadd.f32 %v823_v7, %v820_v2  ;;  %v854_v12 = vmul.f32 %v823_v7, %v823_v7 }
 0x272   : > { %v843_v14 = vadd.f32 %v842_v11, %v828_v6  ;;  %v857_v15 = vadd.f32 %v854_v12, %v853_v9 }
 0x274   : > { %v844_v19 = vadd.f32 %v843_v14, %v831_v10  ;;  %v858_v22 = vadd.f32 %v857_v15, %v855_v13 }
 0x276   : > { %v845_v23 = vrot.slane %v844_v19, 4  ;;  %v859_v24 = vadd.f32 %v858_v22, %v856_v16  ;;  %v1792_v16 = vld [vmem:[%s2389_s7] sm:$0xff]  }
 0x277   : > { %v1059_v22 = vld [vmem:[%s2391_s9] sm:$0xff]  ;;  %1676 = vmatprep.mubr.msk.bf16.mxu0 %vm778_vm2, %v1792_v16 }
 0x278   : > { %v846_v25 = vadd.f32 %v845_v23, %v844_v19  ;;  %v860_v26 = vrot.slane %v859_v24, 4  ;;  %v1060_v19 = vld [vmem:[%s2391_s9 + $0x8] sm:$0xff]  ;;  %v1063_v23 = vld [vmem:[%s2392_s10] sm:$0xff] }
 0x27a   : > { %v847_v27 = vrot.slane %v846_v25, 2  ;;  %v861_v28 = vadd.f32 %v860_v26, %v859_v24  ;;  %v1061_v24 = vld [vmem:[%s2391_s9 + $0x10] sm:$0xff]  ;;  %v1064_v26 = vld [vmem:[%s2392_s10 + $0x8] sm:$0xff] }
 0x27c   : > { %v848_v29 = vadd.f32 %v847_v27, %v846_v25  ;;  %v862_v30 = vrot.slane %v861_v28, 2  ;;  %v1062_v25 = vld [vmem:[%s2391_s9 + $0x18] sm:$0xff] }
 0x27d   : > { %v1066_v27 = vld [vmem:[%s2392_s10 + $0x18] sm:$0xff] }
 0x27e   : > { %v849_v31 = vrot.slane %v848_v29, 1  ;;  %v863_v32 = vadd.f32 %v862_v30, %v861_v28  ;;  %v1065_v28 = vld [vmem:[%s2392_s10 + $0x10] sm:$0xff]  ;;  %v1164_v30 = vld [vmem:[%s2393_s11] sm:$0xff] }
 0x280   : > { %v850_v33 = vadd.f32 %v849_v31, %v848_v29  ;;  %v864_v34 = vrot.slane %v863_v32, 1  ;;  %v1165_v29 = vld [vmem:[%s2393_s11 + $0x8] sm:$0xff] }
 0x281   : > { %v1169_v31 = vld [vmem:[%s2394_s12 + $0x8] sm:$0xff] }
 0x282   : > { %v852_v35 = vmul.f32 0.03125, %v850_v33  ;;  %v865_v36 = vadd.f32 %v864_v34, %v863_v32  ;;  %v1168_v32 = vld [vmem:[%s2394_s12] sm:$0xff]  ;;  %v1167_v33 = vld [vmem:[%s2393_s11 + $0x18] sm:$0xff]  ;;  %v1166_v34 = vld [vmem:[%s2393_s11 + $0x10] sm:$0xff] }
 0x284   : > { %v866_v38 = vmul.f32 0.03125, %v865_v36  ;;  %v867_v39 = vmul.f32 %v852_v35, %v852_v35  ;;  %v871_v40 = vsub.f32 %v823_v7, %v852_v35  ;;  %v872_v41 = vsub.f32 %v828_v6, %v852_v35  ;;  %v1170_v36 = vld [vmem:[%s2394_s12 + $0x10] sm:$0xff] }
 0x285   : > { %v873_v42 = vsub.f32 %v831_v10, %v852_v35  ;;  %v870_v43 = vsub.f32 %v820_v2, %v852_v35  ;;  %v1171_v35 = vld [vmem:[%s2394_s12 + $0x18] sm:$0xff] }
 0x286   : > { %v868_v44 = vsub.f32 %v866_v38, %v867_v39  ;;  %v1260_v38 = vld [vmem:[%s2396_s14] sm:$0xff] }
 0x288   : > { %v869_v48 = vmax.f32 %v868_v44, 0.0 }
 0x28a   : > { %v874_v49 = vadd.f32 1e-05, %v869_v48 }
 0x28c   : > { %1794 = vrsqrt.f32 %v874_v49 }
 0x296   : > { %v1795_v54 = vpop.eup %1794 }
 0x297   : > { %v877_v55 = vmul.f32 %v1795_v54, %v871_v40  ;;  %v878_v57 = vmul.f32 %v1795_v54, %v872_v41  ;;  %v879_v58 = vmul.f32 %v1795_v54, %v873_v42  ;;  %v876_v59 = vmul.f32 %v1795_v54, %v870_v43 }
 0x299   : > { %v901_v60 = vmul.f32 %v888_v45, %v877_v55  ;;  %v902_v61 = vmul.f32 %v893_v53, %v878_v57  ;;  %v903_v62 = vmul.f32 %v898_v52, %v879_v58  ;;  %v900_v63 = vmul.f32 %v883_v47, %v876_v59 }
 0x29a   : > { %v1899_v59 = vmov 0.0  }
 0x29b   : > { %v925_v2 = vadd.f32 %v912_v50, %v901_v60  ;;  %v926_v3 = vadd.f32 %v917_v1, %v902_v61  ;;  %v927_v4 = vadd.f32 %v922_v0, %v903_v62  ;;  %v924_v5 = vadd.f32 %v907_v51, %v900_v63  ;;  %1680 = vmatprep.subr.bf16.mxu1 %v1899_v59 }
 0x29c   : > { %1684 = vmatprep.mubr.msk.bf16.mxu1 %vm1900_vm7, %v1899_v59 }
 0x29d   : > { %v929_v6 = vmax.f32 %v925_v2, 0.0  ;;  %v930_v7 = vmax.f32 %v926_v3, 0.0  ;;  %v931_v8 = vmax.f32 %v927_v4, 0.0  ;;  %v928_v9 = vmax.f32 %v924_v5, 0.0 }
 0x29f   : > { %v2167_v10 = vadd.f32 %v930_v7, %v2077_v17  ;;  %v2170_v11 = vadd.f32 %v931_v8, %v2079_v18  ;;  %v2173_v12 = vadd.f32 %v928_v9, %v2081_v20  ;;  %v2176_v13 = vadd.f32 %v929_v6, %v2083_v21  ;;  %v971_v17 = vld [vmem:[%s2390_s8 + $0x8] sm:$0xff]  ;;  %v970_v18 = vld [vmem:[%s2390_s8] sm:$0xff]  ;;  %v973_v20 = vld [vmem:[%s2390_s8 + $0x18] sm:$0xff] }
 0x2a0   : > { %v972_v21 = vld [vmem:[%s2390_s8 + $0x10] sm:$0xff] }
 0x2a1   : > { %v1773_v14 = vpack.i.bf16 %v2170_v11, %v2167_v10  ;;  %v1768_v15 = vpack.i.bf16 %v2176_v13, %v2173_v12  ;;  %v966_v48 = vpack.c.bf16 %v2176_v13, %v2173_v12  ;;  %v967_v52 = vpack.c.bf16 %v2170_v11, %v2167_v10 }
 0x2a3   : > { %1774 = vrot.lane.b32.xlu1 %v1773_v14, %s2437_s27  ;;  %1769 = vrot.lane.b32.xlu0 %v1768_v15, %s2437_s27  ;;  %s1611_s27 = sshll.u32 %s2022_s0, 7 }
 0x2a4   : > { %s2312_s20 = scalar_lea.hbm %s2399_s17, %s1611_s27 }
 0x2a7   : > { %1784 = vrot.lane.b32.xlu1 %v1773_v14, %s2438_s23  ;;  %1779 = vrot.lane.b32.xlu0 %v1768_v15, %s2438_s23  ;;  %s1441_s23 = sshll.u32 %s2299_s1, 4  ;;  %s1442_s23 = int_to_ptr.vmem [resolvable:$true] %s1441_s23 }
 0x2a8   : > { %p1807_p0 = scmp.lt.s32.totalorder %s1442_s23, %s1805_s18 }
 0x2ab   : > { %981 = vperm.xlu1 %1747, %v971_v17   ;;  %976 = vperm.xlu0 %1746, %v970_v18  }
 0x2af   : > { %991 = vperm.xlu1 %1747, %v973_v20   ;;  %986 = vperm.xlu0 %1746, %v972_v21  }
 0x2b3   : > { %1111 = vperm.xlu1 %1747, %v1060_v19   ;;  %1106 = vperm.xlu0 %1746, %v1059_v22  }
 0x2b7   : > { %1130 = vperm.xlu1 %1747, %v1063_v23   ;;  %1116 = vperm.xlu0 %1746, %v1061_v24  }
 0x2bb   : > { %1121 = vperm.xlu1 %1747, %v1062_v25   ;;  %1135 = vperm.xlu0 %1746, %v1064_v26  }
 0x2bf   : > { %1145 = vperm.xlu1 %1747, %v1066_v27   ;;  %1140 = vperm.xlu0 %1746, %v1065_v28  }
 0x2c3   : > { %1216 = vperm.xlu1 %1747, %v1165_v29   ;;  %1211 = vperm.xlu0 %1746, %v1164_v30  }
 0x2c7   : > { %1240 = vperm.xlu1 %1747, %v1169_v31   ;;  %1235 = vperm.xlu0 %1746, %v1168_v32  }
 0x2cb   : > { %1226 = vperm.xlu1 %1747, %v1167_v33   ;;  %1221 = vperm.xlu0 %1746, %v1166_v34  }
 0x2cf   : > { %1250 = vperm.xlu1 %1747, %v1171_v35   ;;  %1245 = vperm.xlu0 %1746, %v1170_v36  }
 0x2d3   : > { %1263 = vperm.xlu0 %1746, %v1260_v38  }
 0x315   : > { %v1775_v39 = vpop.permute.xlu1 %1774  ;;  %v1770_v40 = vpop.permute.xlu0 %1769 }
 0x316   : > { %v1777_v41 = vunpack.i.h.bf16 %v1775_v39  ;;  %v1776_v42 = vunpack.i.l.bf16 %v1775_v39  ;;  %v1772_v43 = vunpack.i.h.bf16 %v1770_v40  ;;  %v1771_v44 = vunpack.i.l.bf16 %v1770_v40 }
 0x318   : > { %v1591_v45 = vpack.c.bf16 %v1772_v43, %v1771_v44  ;;  %v1594_v47 = vpack.c.bf16 %v1777_v41, %v1776_v42 }
 0x319   : > { %v1780_v49 = vpop.permute.xlu0 %1779  ;;  %v1785_v53 = vpop.permute.xlu1 %1784 }
 0x31a   : > { %1664 = vmatprep.subr.msk.bf16.mxu0 %vm2134_vm4, %v1591_v45  ;;  %v1782_v50 = vunpack.i.h.bf16 %v1780_v49  ;;  %v1781_v51 = vunpack.i.l.bf16 %v1780_v49  ;;  %v1787_v54 = vunpack.i.h.bf16 %v1785_v53  ;;  %v1786_v55 = vunpack.i.l.bf16 %v1785_v53 }
 0x31b   : > { %1665 = vmatpush3.bf16.msk.msra.mxu0 %vm2134_vm4, %v1591_v45 }
 0x31c   : > { %1666 = vmatprep.subr.msk.bf16.mxu0 %vm2134_vm4, %v1594_v47  ;;  %v1597_v57 = vpack.c.bf16 %v1782_v50, %v1781_v51  ;;  %v1600_v58 = vpack.c.bf16 %v1787_v54, %v1786_v55 }
 0x31f   : > { %1667 = vmatpush3.bf16.msk.msra.mxu0 %vm2134_vm4, %v1594_v47 }
 0x320   : > { %1668 = vmatprep.subr.bf16.mxu0 %v966_v48 }
 0x323   : > { %1669 = vmatpush3.bf16.msra.mxu0 %v966_v48 }
 0x324   : > { %1670 = vmatprep.subr.bf16.mxu0 %v967_v52 }
 0x327   : > { %1671 = vmatpush3.bf16.msra.mxu0 %v967_v52 }
 0x328   : > { %1672 = vmatprep.subr.msk.bf16.mxu0 %vm2150_vm6, %v1597_v57 }
 0x32a   : > { %v977_v60 = vpop.permute.xlu0 %976  ;;  %v982_v61 = vpop.permute.xlu1 %981 }
 0x32b   : > { %1673 = vmatpush3.bf16.msk.msra.mxu0 %vm2150_vm6, %v1597_v57 }
 0x32c   : > { %1674 = vmatprep.subr.msk.bf16.mxu0 %vm2150_vm6, %v1600_v58 }
 0x32e   : > { %v987_v2 = vpop.permute.xlu0 %986  ;;  %v992_v56 = vpop.permute.xlu1 %991 }
 0x32f   : > { %1675 = vmatpush3.bf16.msk.msra.mxu0 %vm2150_vm6, %v1600_v58 }
 0x332   : > { %1677 = vmatmul.mubr.msk.bf16.vlgmr.msra.gmra.mrb[4].mxu0 %vm778_vm2, %v1793_v46  ;;  %v1112_v42 = vpop.permute.xlu1 %1111  ;;  %v1107_v43 = vpop.permute.xlu0 %1106 }
 0x336   : > { %v1131_v47 = vpop.permute.xlu1 %1130  ;;  %v1117_v48 = vpop.permute.xlu0 %1116 }
 0x33a   : > { %v1122_v49 = vpop.permute.xlu1 %1121  ;;  %v1136_v50 = vpop.permute.xlu0 %1135 }
 0x405   : > { %v1678_v62 = vpop.f32.mrb[4].mxu0 }
 0x406   : > { %v1044_v63 = vpop.f32.mrb[5].mxu0  ;;  %v1053_v4 = vadd.f32 %v1678_v62, %v987_v2  ;;  %v1141_v62 = vpop.permute.xlu0 %1140 }
 0x407   : > { %v1045_v0 = vadd.f32 %v1044_v63, %v977_v60  ;;  %v1679_v1 = vpop.f32.mrb[6].mxu0 }
 0x408   : > { %v1047_v3 = vpop.f32.mrb[7].mxu0  ;;  %v1056_v7 = vadd.f32 %v1679_v1, %v992_v56  ;;  %v1079_v14 = vmul.f32 %v1053_v4, %v1053_v4 }
 0x409   : > { %v1048_v5 = vadd.f32 %v1047_v3, %v982_v61  ;;  %v1077_v6 = vmul.f32 %v1045_v0, %v1045_v0  ;;  %v1146_v61 = vpop.permute.xlu1 %1145 }
 0x40a   : > { %v1080_v18 = vmul.f32 %v1056_v7, %v1056_v7 }
 0x40b   : > { %v1067_v8 = vadd.f32 %v1048_v5, %v1045_v0  ;;  %v1078_v9 = vmul.f32 %v1048_v5, %v1048_v5 }
 0x40d   : > { %v1068_v15 = vadd.f32 %v1067_v8, %v1053_v4  ;;  %v1081_v17 = vadd.f32 %v1078_v9, %v1077_v6 }
 0x40f   : > { %v1069_v20 = vadd.f32 %v1068_v15, %v1056_v7  ;;  %v1082_v21 = vadd.f32 %v1081_v17, %v1079_v14 }
 0x411   : > { %v1070_v16 = vrot.slane %v1069_v20, 4  ;;  %v1083_v19 = vadd.f32 %v1082_v21, %v1080_v18 }
 0x413   : > { %v1071_v22 = vadd.f32 %v1070_v16, %v1069_v20  ;;  %v1084_v23 = vrot.slane %v1083_v19, 4 }
 0x415   : > { %v1072_v24 = vrot.slane %v1071_v22, 2  ;;  %v1085_v25 = vadd.f32 %v1084_v23, %v1083_v19 }
 0x417   : > { %v1073_v26 = vadd.f32 %v1072_v24, %v1071_v22  ;;  %v1086_v27 = vrot.slane %v1085_v25, 2 }
 0x419   : > { %v1074_v28 = vrot.slane %v1073_v26, 1  ;;  %v1087_v29 = vadd.f32 %v1086_v27, %v1085_v25 }
 0x41b   : > { %v1075_v30 = vadd.f32 %v1074_v28, %v1073_v26  ;;  %v1088_v31 = vrot.slane %v1087_v29, 1 }
 0x41d   : > { %v1076_v32 = vmul.f32 0.03125, %v1075_v30  ;;  %v1089_v33 = vadd.f32 %v1088_v31, %v1087_v29 }
 0x41f   : > { %v1090_v34 = vmul.f32 0.03125, %v1089_v33  ;;  %v1091_v35 = vmul.f32 %v1076_v32, %v1076_v32  ;;  %v1094_v36 = vsub.f32 %v1045_v0, %v1076_v32  ;;  %v1095_v38 = vsub.f32 %v1048_v5, %v1076_v32 }
 0x420   : > { %v1096_v39 = vsub.f32 %v1053_v4, %v1076_v32  ;;  %v1097_v40 = vsub.f32 %v1056_v7, %v1076_v32 }
 0x421   : > { %v1092_v41 = vsub.f32 %v1090_v34, %v1091_v35 }
 0x423   : > { %v1093_v44 = vmax.f32 %v1092_v41, 0.0 }
 0x425   : > { %v1098_v45 = vadd.f32 1e-05, %v1093_v44 }
 0x427   : > { %1796 = vrsqrt.f32 %v1098_v45  ;;  %v1217_v45 = vpop.permute.xlu1 %1216 }
 0x431   : > { %v1797_v51 = vpop.eup %1796 }
 0x432   : > { %v1100_v52 = vmul.f32 %v1797_v51, %v1094_v36  ;;  %v1101_v53 = vmul.f32 %v1797_v51, %v1095_v38  ;;  %v1102_v54 = vmul.f32 %v1797_v51, %v1096_v39  ;;  %v1103_v55 = vmul.f32 %v1797_v51, %v1097_v40 }
 0x434   : > { %v1124_v57 = vmul.f32 %v1107_v43, %v1100_v52  ;;  %v1125_v58 = vmul.f32 %v1112_v42, %v1101_v53  ;;  %v1126_v46 = vmul.f32 %v1117_v48, %v1102_v54  ;;  %v1127_v60 = vmul.f32 %v1122_v49, %v1103_v55 }
 0x436   : > { %v1148_v63 = vadd.f32 %v1131_v47, %v1124_v57  ;;  %v1149_v0 = vadd.f32 %v1136_v50, %v1125_v58  ;;  %v1150_v1 = vadd.f32 %v1141_v62, %v1126_v46  ;;  %v1151_v2 = vadd.f32 %v1146_v61, %v1127_v60  ;;  %v1212_v47 = vpop.permute.xlu0 %1211  ;;  %v1241_v50 = vpop.permute.xlu1 %1240 }
 0x438   : > { %v1152_v3 = vmax.f32 %v1148_v63, 0.0  ;;  %v1153_v4 = vmax.f32 %v1149_v0, 0.0  ;;  %v1154_v5 = vmax.f32 %v1150_v1, 0.0  ;;  %v1155_v56 = vmax.f32 %v1151_v2, 0.0 }
 0x43a   : > { %v1156_v6 = vadd.f32 %v1152_v3, %v2173_v12  ;;  %v1157_v7 = vadd.f32 %v1153_v4, %v2176_v13  ;;  %v1158_v8 = vadd.f32 %v1154_v5, %v2167_v10  ;;  %v1159_v9 = vadd.f32 %v1155_v56, %v2170_v11  ;;  %v1236_v51 = vpop.permute.xlu0 %1235  ;;  %v1227_v52 = vpop.permute.xlu1 %1226 }
 0x43c   : > { %v1160_v14 = vmax.f32 %v1156_v6, 0.0  ;;  %v1161_v15 = vmax.f32 %v1157_v7, 0.0  ;;  %v1162_v17 = vmax.f32 %v1158_v8, 0.0  ;;  %v1163_v18 = vmax.f32 %v1159_v9, 0.0  ;;  %v1257_v7 = vld [vmem:[%s2395_s13] sm:$0xf] }
 0x43d   : > { %v1336_v8 = vld [vmem:[%s2397_s15] sm:$0xff] }
 0x43e   : > { %v1172_v20 = vadd.f32 %v1161_v15, %v1160_v14  ;;  %v1182_v21 = vmul.f32 %v1160_v14, %v1160_v14  ;;  %v1183_v16 = vmul.f32 %v1161_v15, %v1161_v15  ;;  %v1184_v22 = vmul.f32 %v1162_v17, %v1162_v17  ;;  %v1222_v53 = vpop.permute.xlu0 %1221  ;;  %v1251_v0 = vpop.permute.xlu1 %1250  ;;  %1690 = vmatprep.mubr.msk.f32.mxu0 %vm1338_vm9, %v1336_v8 }
 0x43f   : > { %v1185_v25 = vmul.f32 %v1163_v18, %v1163_v18 }
 0x440   : > { %v1173_v19 = vadd.f32 %v1172_v20, %v1162_v17  ;;  %v1186_v23 = vadd.f32 %v1183_v16, %v1182_v21 }
 0x442   : > { %v1174_v24 = vadd.f32 %v1173_v19, %v1163_v18  ;;  %v1187_v26 = vadd.f32 %v1186_v23, %v1184_v22  ;;  %v1246_v1 = vpop.permute.xlu0 %1245 }
 0x444   : > { %v1175_v12 = vrot.slane %v1174_v24, 4  ;;  %v1188_v27 = vadd.f32 %v1187_v26, %v1185_v25  ;;  %v1321_v26 = vshrl.u32 %v700_v37, 7  ;;  %v1337_v37 = vld [vmem:[%s2397_s15 + $0x8] sm:$0xff] }
 0x446   : > { %v1176_v13 = vadd.f32 %v1175_v12, %v1174_v24  ;;  %v1189_v28 = vrot.slane %v1188_v27, 4 }
 0x448   : > { %v1177_v10 = vrot.slane %v1176_v13, 2  ;;  %v1190_v29 = vadd.f32 %v1189_v28, %v1188_v27 }
 0x44a   : > { %v1178_v11 = vadd.f32 %v1177_v10, %v1176_v13  ;;  %v1191_v30 = vrot.slane %v1190_v29, 2 }
 0x44c   : > { %v1179_v31 = vrot.slane %v1178_v11, 1  ;;  %v1192_v32 = vadd.f32 %v1191_v30, %v1190_v29 }
 0x44e   : > { %v1193_v33 = vrot.slane %v1192_v32, 1  ;;  %v1180_v34 = vadd.f32 %v1179_v31, %v1178_v11  ;;  %v1901_v31 = vmov 1.0  }
 0x450   : > { %v1194_v35 = vadd.f32 %v1193_v33, %v1192_v32  ;;  %v1181_v36 = vmul.f32 0.03125, %v1180_v34 }
 0x452   : > { %v1195_v38 = vmul.f32 0.03125, %v1194_v35  ;;  %v1196_v39 = vmul.f32 %v1181_v36, %v1181_v36  ;;  %v1199_v40 = vsub.f32 %v1160_v14, %v1181_v36  ;;  %v1200_v41 = vsub.f32 %v1161_v15, %v1181_v36  ;;  %v1311_v14 = vld [vmem:[%s598_s29] sm:$0xff]  ;;  %s1800_s29 = scalar_lea.vmem %s1442_s23, 128 }
 0x453   : > { %v1201_v42 = vsub.f32 %v1162_v17, %v1181_v36  ;;  %v1202_v43 = vsub.f32 %v1163_v18, %v1181_v36  ;;  %p1801_p11 = scmp.ne.s32.totalorder %s1442_s23, %s1800_s29  ;;  %p1808_p1 = scmp.lt.s32.totalorder %s1806_s3, %s1800_s29 }
 0x454   : > { %v1197_v44 = vsub.f32 %v1195_v38, %v1196_v39 }
 0x455   : > { %p1802_p12 = pnand %p1801_p11, %p2039_p5  ;;  %p1809_p2 = por %p1808_p1, %p1807_p0 }
 0x456   : > { %v1198_v48 = vmax.f32 %v1197_v44, 0.0 }
 0x457   : > { %p1803_p13 = pneg %p1802_p12 }
 0x458   : > { %v1203_v49 = vadd.f32 1e-05, %v1198_v48 }
 0x459   : > { %p1810_p3 = pnand %p1809_p2, %p1803_p13 }
 0x45a   : > { %1798 = vrsqrt.f32 %v1203_v49 }
 0x464   : > { %v1799_v54 = vpop.eup %1798 }
 0x465   : > { %v1205_v55 = vmul.f32 %v1799_v54, %v1199_v40  ;;  %v1206_v57 = vmul.f32 %v1799_v54, %v1200_v41  ;;  %v1207_v58 = vmul.f32 %v1799_v54, %v1201_v42  ;;  %v1208_v46 = vmul.f32 %v1799_v54, %v1202_v43 }
 0x467   : > { %v1229_v60 = vmul.f32 %v1212_v47, %v1205_v55  ;;  %v1230_v61 = vmul.f32 %v1217_v45, %v1206_v57  ;;  %v1231_v62 = vmul.f32 %v1222_v53, %v1207_v58  ;;  %v1232_v63 = vmul.f32 %v1227_v52, %v1208_v46 }
 0x469   : > { %v1253_v2 = vadd.f32 %v1236_v51, %v1229_v60  ;;  %v1254_v3 = vadd.f32 %v1241_v50, %v1230_v61  ;;  %v1255_v4 = vadd.f32 %v1246_v1, %v1231_v62  ;;  %v1256_v5 = vadd.f32 %v1251_v0, %v1232_v63 }
 0x46b   : > { %v1258_v56 = vpack.c.bf16 %v1254_v3, %v1253_v2  ;;  %v1259_v6 = vpack.c.bf16 %v1256_v5, %v1255_v4 }
 0x46d   : > { %1681 = vmatpush3.bf16.msra.mxu1 %v1258_v56 }
 0x46e   : > { %1682 = vmatprep.subr.bf16.mxu1 %v1899_v59  ;;  %v1264_v59 = vpop.permute.xlu0 %1263 }
 0x471   : > { %1683 = vmatpush3.bf16.msra.mxu1 %v1259_v6 }
 0x474   : > { %1685 = vmatmul.mubr.msk.bf16.vlgmr.msra.gmra.mrb[4].mxu1 %vm1266_vm8, %v1257_v7 }
 0x547   : > { %v1304_v9 = vpop.f32.mrb[4].mxu1 }
 0x548   : > { %v1305_v15 = vadd.f32 %v1304_v9, %v1264_v59  ;;  %v1686_v17 = vpop.f32.mrb[5].mxu1 }
 0x549   : > { %v1307_v18 = vpop.f32.mrb[6].mxu1 }
 0x54a   : > { %1310 = vst [vmem:[%s2299_s1] sm:$0xff] %v1305_v15  ;;  %v1312_v20 = vadd.f32 %v1311_v14, %v1305_v15  ;;  %v1687_v21 = vpop.f32.mrb[7].mxu1 }
 0x54c   : > { %v1313_v16 = vmul.f32 2.0, %v1312_v20 }
 0x54e   : > { %v1314_v19 = vrot.slane %v1313_v16, 4 }
 0x550   : > { %v1315_v22 = vmax.f32 %v1313_v16, %v1314_v19 }
 0x552   : > { %v1316_v23 = vrot.slane %v1315_v22, 2 }
 0x554   : > { %v1317_v24 = vmax.f32 %v1315_v22, %v1316_v23 }
 0x556   : > { %v1318_v25 = vrot.slane %v1317_v24, 1 }
 0x558   : > { %v1319_v12 = vmax.f32 %v1317_v24, %v1318_v25 }
 0x55a   : > { %vm1322_vm10 = vcmp.eq.f32.partialorder %v1313_v16, %v1319_v12 }
 0x55b   : > { %v1323_v27 = vsel %vm1322_vm10, %v1321_v26, 8 }
 0x55c   : > { %v1324_v13 = vrot.slane %v1323_v27, 4 }
 0x55e   : > { %vm1325_vm11 = vcmp.lt.s32.totalorder %v1323_v27, %v1324_v13 }
 0x55f   : > { %v1326_v28 = vsel %vm1325_vm11, %v1323_v27, %v1324_v13 }
 0x560   : > { %v1327_v10 = vrot.slane %v1326_v28, 2 }
 0x562   : > { %vm1328_vm12 = vcmp.lt.s32.totalorder %v1326_v28, %v1327_v10 }
 0x563   : > { %v1329_v29 = vsel %vm1328_vm12, %v1326_v28, %v1327_v10 }
 0x564   : > { %v1330_v11 = vrot.slane %v1329_v29, 1 }
 0x566   : > { %vm1331_vm13 = vcmp.lt.s32.totalorder %v1329_v29, %v1330_v11 }
 0x567   : > { %v1332_v30 = vsel %vm1331_vm13, %v1329_v29, %v1330_v11 }
 0x568   : > { %vm1333_vm14 = vcmp.eq.s32.totalorder %v1321_v26, %v1332_v30 }
 0x569   : > { %1688 = vmatprep.subr.msk.mxu0 %vm1333_vm14, %v1901_v31 }
 0x56a   : > { %1689 = vmatpush3.msk.msra.mxu0 %vm1333_vm14, %v1901_v31 }
 0x56b   : > { %1691 = vmatmul.mubr.msk.f32.vlgmr.msra.gmra.mrb[8].mxu0 %vm1338_vm9, %v1337_v37 }
 0x56c   : > { %1813 = shalt.err (!%p1810_p3)
}
 0x56d   : > { %s1814_s1 = scalar_lea.hbm %s2312_s20, 128  ;;  %s1818_s25 = scalar_lea.hbm %s2399_s17, 256 }
 0x56e   : > { %p1815_p4 = scmp.ne.s32.totalorder %s2312_s20, %s1814_s1  ;;  %p1819_p9 = scmp.lt.u32.totalorder %s2312_s20, %s2399_s17 }
 0x56f   : > { %p1820_p10 = scmp.lt.u32.totalorder %s1818_s25, %s1814_s1  ;;  %p1822_p12 = scmp.lt.u32.totalorder %s1814_s1, %s2312_s20 }
 0x570   : > { %p1816_p7 = pnand %p1815_p4, %p2039_p5 }
 0x571   : > { %p1821_p11 = por %p1820_p10, %p1819_p9 }
 0x572   : > { %p1817_p8 = pneg %p1816_p7 }
 0x573   : > { %p1823_p13 = por %p1822_p12, %p1821_p11 }
 0x575   : > { %p1824_p0 = pnand %p1823_p13, %p1817_p8 }
 0x577   : > { %1827 = shalt.err (!%p1824_p0)
}
 0x578   : > { %1694 = dma.vmem_to_hbm [thread:$0]  (%p2039_p5), %s1442_s23, 128, %s2312_s20, %s1423_s21  }
 0x579   : > { %s1565_s3 = sshll.u32 %s2292_s30, 4  ;;  %s1616_s24 = sshll.u32 %s2022_s0, 8 }
 0x57a   : > { %s590_s29 = scalar_lea.vmem [#allocation4], %s1565_s3  ;;  %s2439_s1 = sld [smem:[#allocation19_spill]] }
 0x57b   : > { %s1454_s27 = sshll.u32 %s590_s29, 4  ;;  %s1428_s4 = scalar_lea.sflag [#allocation5], %s2292_s30  ;;  %s2334_s27 = int_to_ptr.vmem [resolvable:$true] %s1454_s27 }
 0x57c   : > { %s1828_s23 = scalar_lea.vmem %s2334_s27, 256  ;;  %s1903_s0 = smov [#allocation4]  }
 0x57d   : > { %p1829_p1 = scmp.ne.s32.totalorder %s2334_s27, %s1828_s23  ;;  %s1832_s20 = sshll.u32 %s1903_s0, 4  ;;  %s1833_s20 = int_to_ptr.vmem [resolvable:$false] %s1832_s20 }
 0x57e   : > { %s1834_s21 = scalar_lea.vmem %s1833_s20, 512  ;;  %p1835_p4 = scmp.lt.s32.totalorder %s2334_s27, %s1833_s20 }
 0x57f   : > { %p1830_p2 = pnand %p1829_p1, %p2039_p5  ;;  %p1836_p7 = scmp.lt.s32.totalorder %s1834_s21, %s1828_s23 }
 0x580   : > { %s2339_s18 = scalar_lea.hbm %s2439_s1, %s1616_s24 }
 0x581   : > { %p1831_p3 = pneg %p1830_p2  ;;  %p1837_p8 = por %p1836_p7, %p1835_p4 }
 0x583   : > { %p1838_p9 = pnand %p1837_p8, %p1831_p3 }
 0x63e   : > { %v1692_v32 = vpop.f32.mrb[8].mxu0 }
 0x63f   : > { %1421 = vst [vmem:[%s590_s29 + $0x8] sm:$0xff] %v1692_v32  ;;  %v1411_v33 = vpop.f32.mrb[9].mxu0 }
 0x640   : > { %1420 = vst [vmem:[%s590_s29] sm:$0xff] %v1411_v33 }
 0x641   : > { %1841 = shalt.err (!%p1838_p9)
}
 0x642   : > { %s1842_s3 = scalar_lea.hbm %s2339_s18, 256  ;;  %s1846_s25 = scalar_lea.hbm %s2439_s1, 512 }
 0x643   : > { %p1843_p10 = scmp.ne.s32.totalorder %s2339_s18, %s1842_s3  ;;  %p1847_p13 = scmp.lt.u32.totalorder %s2339_s18, %s2439_s1 }
 0x644   : > { %p1848_p0 = scmp.lt.u32.totalorder %s1846_s25, %s1842_s3  ;;  %p1850_p2 = scmp.lt.u32.totalorder %s1842_s3, %s2339_s18 }
 0x645   : > { %p1844_p11 = pnand %p1843_p10, %p2039_p5 }
 0x646   : > { %p1849_p1 = por %p1848_p0, %p1847_p13 }
 0x647   : > { %p1845_p12 = pneg %p1844_p11 }
 0x648   : > { %p1851_p3 = por %p1850_p2, %p1849_p1 }
 0x64a   : > { %p1852_p4 = pnand %p1851_p3, %p1845_p12 }
 0x64c   : > { %1855 = shalt.err (!%p1852_p4)
}
 0x64d   : > { %s1904_s23 = smov 128   ;;  %s1905_s20 = smov 8  }
 0x64e   : > { %1695 = dma.vmem_to_hbm [thread:$0]  (%p2039_p5), %s2334_s27, 256, %s2339_s18, %s1428_s4, %s1904_s23, %s1904_s23, %s1905_s20  }
 0x64f PF: > { %s2440_s21 = sld [smem:[#allocation10_spill]]  ;;  %s2441_s29 = sld [smem:[#allocation8_spill]] }
 0x655   : > { %p1705_p7 = scmp.ge.s32.totalorder %s2440_s21, 2  ;;  %s1469_s25 = sand.u32 1, %s2441_s29  }
 0x656   : > { %s1470_s3 = scalar_lea.sflag [#allocation3], %s1469_s25 }
 0x657   : > { %p1699_p8 = pnand %p1705_p7, %p2043_p6 }
 0x659   : > { %1873 = dma.done.wait (!%p1699_p8), %s1470_s3, 128  }
 0x65a   : > { %1875 = vsyncadd (!%p1699_p8), %s1470_s3, 4294967168  ;;  %s1479_s19 = scalar_lea.sflag [#allocation5], %s1469_s25 }
 0x65b   : > { %1877 = dma.done.wait (!%p1699_p8), %s1479_s19, 256  }
 0x65c   : > { %1879 = vsyncadd (!%p1699_p8), %s1479_s19, 4294967040  ;;  %s2443_s30 = sld [smem:[#allocation11_spill]]  ;;  %s2444_s0 = sld [smem:[#allocation9_spill]] }
 0x65d   : > { %s2445_s29 = sld [smem:[#allocation12_spill]]  ;;  %s2446_s27 = smov %s1886_s28 }
 0x662   : > { %p32_p5 = scmp.ge.s32.totalorder %s2443_s30, 4   ;;  %s2447_s28 = smov %s2444_s0 }
 0x664   :  { %34 = sbr.rel (!%p32_p5) target bundleno = 12 (0xc), region = 143 }
 0x66b   :  { %1484 = vsyncpa [#allocation3], 1 }
 0x66c   :  { %1486 = vsyncpa [#allocation3 + $0x1], 1 }
 0x66d   :  { %1487 = vsyncpa [#allocation5], 1 }
 0x66e   :  { %1489 = vsyncpa [#allocation5 + $0x1], 1 }

</bundles_post_ra>
